<compile_context>
chip_gen: v5e
topology: v5e:2x2
jax: 0.10.0
libtpu: 0.0.40
codegen_flags: <defaults>
</compile_context>

<pallas_src>
import jax
import jax.numpy as jnp
from jax.experimental import pallas as pl
from jax.experimental.pallas import tpu as pltpu


def _round_up(x, m):
    return ((x + m - 1) // m) * m


# ---------------------------------------------------------------------------
# Pallas kernel (static offsets / sizes closed over as Python ints)
# ---------------------------------------------------------------------------
def _make_kernel(off, p, num_classes):
    def kernel(x_ref, a_ref, bid_ref, w_ref, out_ref):
        f32 = jnp.float32
        bf16 = jnp.bfloat16
        NEG = -1e30  # Python literal (must NOT be a captured jnp constant)

        a = a_ref[...]                       # (NP, NP) bf16 row-normalized adjacency
        bid = bid_ref[0:1, :]                # (1, NP) int32 graph ids (-1 = padding)

        def bias_row(o):                     # (1, P) f32
            return w_ref[o:o + 1, :].astype(f32)

        def sage(h, w_off, b_off):
            # SAGEConv (mean aggr): relu(lin_l(mean_nb(h)) + lin_r(h)),
            # fused as concat([agg, h]) @ [wl; wr]  (single K=2P MXU pass).
            hb = h.astype(bf16)
            agg = jnp.dot(a, hb, preferred_element_type=f32)             # (NP, P)
            x2 = jnp.concatenate([agg.astype(bf16), hb], axis=-1)        # (NP, 2P)
            w = w_ref[w_off:w_off + 2 * p, :]                            # (2P, P) bf16
            out = jnp.dot(x2, w, preferred_element_type=f32) + bias_row(b_off)
            return jnp.maximum(out, 0.0)

        h = x_ref[...]                                                    # (NP, P) bf16
        h = sage(h, off["w_l1"], off["b_l1"])                             # conv1
        h = sage(h, off["w_l2"], off["b_l2"])                             # convs[0]
        h = sage(h, off["w_l3"], off["b_l3"])                             # convs[1]
        hb = h.astype(bf16)

        # --- GlobalAttention pooling (lane-dense gate, in-kernel segment mask)
        go = off["gate"]
        wg_blk = w_ref[go:go + 8, :]                                      # (8, P), row0 = wg
        gate8 = jax.lax.dot_general(                                      # (8, NP) f32
            wg_blk, hb, (((1,), (1,)), ((), ())),
            preferred_element_type=f32)
        bg = w_ref[go + 8:go + 9, :].astype(f32)[:, :1]                   # (1, 1)
        gate_row = gate8[0:1, :] + bg                                     # (1, NP)

        bp = out_ref.shape[0]
        npad = a.shape[0]
        row = jax.lax.broadcasted_iota(jnp.int32, (bp, npad), 0)          # (BP, NP)
        mask = row == bid                                                 # (BP, NP)
        scores = jnp.where(mask, gate_row, NEG)
        smax = jnp.max(scores, axis=-1, keepdims=True)
        expw = jnp.where(mask, jnp.exp(scores - smax), 0.0)
        denom = jnp.maximum(jnp.sum(expw, axis=-1, keepdims=True), 1e-30)
        alpha = expw * pl.reciprocal(denom, approx=True)                  # (BP, NP)
        pooled = jnp.dot(alpha.astype(bf16), hb,
                         preferred_element_type=f32)                      # (BP, P)

        # --- MLP head ---
        w1 = w_ref[off["w_1"]:off["w_1"] + p, :]
        h1 = jnp.maximum(
            jnp.dot(pooled.astype(bf16), w1, preferred_element_type=f32)
            + bias_row(off["b_1"]), 0.0)
        # TODO(synk): F.dropout(p=0.5) is identity in eval mode; training dropout omitted.
        w2 = w_ref[off["w_2"]:off["w_2"] + p, :]
        logits = (jnp.dot(h1.astype(bf16), w2, preferred_element_type=f32)
                  + bias_row(off["b_2"]))                                 # (BP, P)

        # mask padded class lanes, then log_softmax over classes
        lane = jax.lax.broadcasted_iota(jnp.int32, logits.shape, 1)
        logits = jnp.where(lane < num_classes, logits, NEG)
        lmax = jnp.max(logits, axis=-1, keepdims=True)
        sh = logits - lmax
        lse = jnp.log(jnp.sum(jnp.exp(sh), axis=-1, keepdims=True))
        out_ref[...] = (sh - lse).astype(out_ref.dtype)

    return kernel


# ---------------------------------------------------------------------------
# Host-side (run once, outside the jitted per-call path)
# ---------------------------------------------------------------------------
def pack_params(params, P):
    """Pack all 15 parameter tensors into one bf16 (rows, P) slab, 16-row aligned."""
    (wl1, bl1, wr1, wl2, bl2, wr2, wl3, bl3, wr3,
     wg, bg, w1, b1, w2, b2) = params

    def pad_block(arr, rows, cols=P):
        blk = jnp.zeros((rows, cols), jnp.bfloat16)
        return blk.at[:arr.shape[0], :arr.shape[1]].set(arr.astype(jnp.bfloat16))

    sections, off = [], {}

    def add(name, blk):
        off[name] = sum(int(s.shape[0]) for s in sections)
        sections.append(blk)

    def fused(wl, wr):   # stacked [wl; wr] -> (2P, P)
        return jnp.concatenate([pad_block(wl, P), pad_block(wr, P)], axis=0)

    add("w_l1", fused(wl1, wr1)); add("b_l1", pad_block(bl1, 16))
    add("w_l2", fused(wl2, wr2)); add("b_l2", pad_block(bl2, 16))
    add("w_l3", fused(wl3, wr3)); add("b_l3", pad_block(bl3, 16))
    gate_blk = jnp.zeros((16, P), jnp.bfloat16)
    gate_blk = gate_blk.at[0, :wg.shape[0]].set(wg[:, 0].astype(jnp.bfloat16))
    gate_blk = gate_blk.at[8, :].set(bg[0, 0].astype(jnp.bfloat16))
    add("gate", gate_blk)
    add("w_1", pad_block(w1, P)); add("b_1", pad_block(b1, 16))
    add("w_2", pad_block(w2, P)); add("b_2", pad_block(b2, 16))
    wpack = jnp.concatenate(sections, axis=0)                 # (R, P) bf16
    return wpack, off


def prepare_graph(x, edge_index, batch, NP, P):
    """Dense row-normalized adjacency (bf16), padded bf16 features, batch-id row."""
    n_nodes, n_feat = x.shape
    src, dst = edge_index[0], edge_index[1]
    adj = jnp.zeros((NP, NP), jnp.float32).at[dst, src].add(1.0)
    deg = jnp.sum(adj, axis=-1, keepdims=True)
    adj = (adj / jnp.maximum(deg, 1.0)).astype(jnp.bfloat16)

    x_p = jnp.zeros((NP, P), jnp.bfloat16).at[:n_nodes, :n_feat].set(
        x.astype(jnp.bfloat16))
    bid = jnp.full((8, NP), -1, jnp.int32).at[0, :n_nodes].set(
        batch.astype(jnp.int32))
    return x_p, adj, bid


def build_forward(off, P, NP, BP, num_graphs, num_classes):
    kernel = _make_kernel(off, P, num_classes)

    @jax.jit
    def forward(x_p, adj, bid, wpack):
        operands = (x_p, adj, bid, wpack)
        out_p = pl.pallas_call(
            kernel,
            out_shape=jax.ShapeDtypeStruct((BP, P), jnp.float32),
            grid=(1,),
            in_specs=[pl.BlockSpec(o.shape, lambda i: (0, 0)) for o in operands],
            out_specs=pl.BlockSpec((BP, P), lambda i: (0, 0)),
            compiler_params=pltpu.CompilerParams(
                dimension_semantics=("arbitrary",),
                vmem_limit_bytes=32 * 1024 * 1024),
        )(*operands)
        return out_p[:num_graphs, :num_classes]

    return forward


# ---------------------------------------------------------------------------
# Deterministic parameter construction (synthetic weights)
# ---------------------------------------------------------------------------
def make_params(key, num_features, hidden, num_classes):
    keys = jax.random.split(key, 16)

    def dense(k, fan_in, fan_out):
        bound = 1.0 / jnp.sqrt(jnp.float32(fan_in))
        return jax.random.uniform(k, (fan_in, fan_out), jnp.float32, -bound, bound)

    def bias(k, fan_in, fan_out):
        bound = 1.0 / jnp.sqrt(jnp.float32(fan_in))
        return jax.random.uniform(k, (1, fan_out), jnp.float32, -bound, bound)

    wl1 = dense(keys[0], num_features, hidden)
    bl1 = bias(keys[1], num_features, hidden)
    wr1 = dense(keys[2], num_features, hidden)
    wl2 = dense(keys[3], hidden, hidden)
    bl2 = bias(keys[4], hidden, hidden)
    wr2 = dense(keys[5], hidden, hidden)
    wl3 = dense(keys[6], hidden, hidden)
    bl3 = bias(keys[7], hidden, hidden)
    wr3 = dense(keys[8], hidden, hidden)
    wg = dense(keys[9], hidden, 1)
    bg = bias(keys[10], hidden, 1)
    w1 = dense(keys[11], hidden, hidden)
    b1 = bias(keys[12], hidden, hidden)
    w2 = dense(keys[13], hidden, num_classes)
    b2 = bias(keys[14], hidden, num_classes)

    return (wl1, bl1, wr1, wl2, bl2, wr2, wl3, bl3, wr3,
            wg, bg, w1, b1, w2, b2)


if __name__ == "__main__":
    NUM_FEATURES = 8
    HIDDEN = 32
    NUM_CLASSES = 4
    N_NODES = 16
    N_EDGES = 40
    N_GRAPHS = 2

    key = jax.random.PRNGKey(0)
    k_x, k_src, k_dst, k_params = jax.random.split(key, 4)

    x = jax.random.normal(k_x, (N_NODES, NUM_FEATURES), jnp.float32)
    src = jax.random.randint(k_src, (N_EDGES,), 0, N_NODES)
    dst = jax.random.randint(k_dst, (N_EDGES,), 0, N_NODES)
    edge_index = jnp.stack([src, dst], axis=0)                           # (2, E)
    batch = (jnp.arange(N_NODES) >= (N_NODES // 2)).astype(jnp.int32)    # 2 graphs

    params = make_params(k_params, NUM_FEATURES, HIDDEN, NUM_CLASSES)

    # padded sizes: common lane width P, node rows NP, graph rows BP
    P = _round_up(max(NUM_FEATURES, HIDDEN, NUM_CLASSES), 128)
    NP = _round_up(N_NODES, 128)
    BP = _round_up(N_GRAPHS, 8)

    # host-side packing (done ONCE, outside the jitted per-call path)
    wpack, off = pack_params(params, P)
    x_p, adj, bid = prepare_graph(x, edge_index, batch, NP, P)

    forward = build_forward(off, P, NP, BP, N_GRAPHS, NUM_CLASSES)
    out = forward(x_p, adj, bid, wpack)
    out = jax.block_until_ready(out)

    assert out.shape == (N_GRAPHS, NUM_CLASSES)
    assert jnp.allclose(jnp.sum(jnp.exp(out), axis=-1), 1.0, atol=1e-3)
    assert bool(jnp.all(jnp.isfinite(out)))
    print("KERNEL_OK")
</pallas_src>

<mosaic_0001>
module attributes {stable_mosaic.version = 11 : i64} {
  func.func @kernel(%arg0: i32, %arg1: memref<128x128xbf16, #tpu.memory_space<vmem>>, %arg2: memref<128x128xbf16, #tpu.memory_space<vmem>>, %arg3: memref<8x128xi32, #tpu.memory_space<vmem>>, %arg4: memref<1120x128xbf16, #tpu.memory_space<vmem>>, %arg5: memref<8x128xf32, #tpu.memory_space<vmem>>) attributes {dimension_semantics = [#tpu.dimension_semantics<arbitrary>], iteration_bounds = array<i64: 1>, scalar_prefetch = 0 : i64, scratch_operands = 0 : i64, tpu.core_type = #tpu.core_type<tc>, window_params = [{pipeline_mode = #tpu.pipeline_mode<synchronous>, transform_indices = @transform_0, window_bounds = array<i64: 128, 128>}, {pipeline_mode = #tpu.pipeline_mode<synchronous>, transform_indices = @transform_1, window_bounds = array<i64: 128, 128>}, {pipeline_mode = #tpu.pipeline_mode<synchronous>, transform_indices = @transform_2, window_bounds = array<i64: 8, 128>}, {pipeline_mode = #tpu.pipeline_mode<synchronous>, transform_indices = @transform_3, window_bounds = array<i64: 1120, 128>}, {pipeline_mode = #tpu.pipeline_mode<synchronous>, transform_indices = @transform_4, window_bounds = array<i64: 8, 128>}]} {
    %c0 = arith.constant 0 : index
    %c0_0 = arith.constant 0 : index
    %0 = vector.load %arg2[%c0, %c0_0] : memref<128x128xbf16, #tpu.memory_space<vmem>>, vector<128x128xbf16>
    %c0_1 = arith.constant 0 : index
    %c0_2 = arith.constant 0 : index
    %1 = vector.load %arg3[%c0_1, %c0_2] : memref<8x128xi32, #tpu.memory_space<vmem>>, vector<1x128xi32>
    %c0_3 = arith.constant 0 : index
    %c0_4 = arith.constant 0 : index
    %2 = vector.load %arg1[%c0_3, %c0_4] : memref<128x128xbf16, #tpu.memory_space<vmem>>, vector<128x128xbf16>
    %cst = arith.constant dense<0.000000e+00> : vector<128x128xf32>
    %3 = tpu.matmul %0, %2, %cst {dimension_numbers = #tpu.dot_dimension_numbers<[1], [0], [0], [1], [0, 0, 1, 1], [], []>} : vector<128x128xbf16>, vector<128x128xbf16>, vector<128x128xf32> -> vector<128x128xf32>
    %4 = arith.truncf %3 : vector<128x128xf32> to vector<128x128xbf16>
    %5 = tpu.concatenate %4, %2 in 1 : vector<128x128xbf16>, vector<128x128xbf16> -> vector<128x256xbf16>
    %c0_5 = arith.constant 0 : index
    %c0_6 = arith.constant 0 : index
    %6 = vector.load %arg4[%c0_5, %c0_6] : memref<1120x128xbf16, #tpu.memory_space<vmem>>, vector<256x128xbf16>
    %cst_7 = arith.constant dense<0.000000e+00> : vector<128x128xf32>
    %7 = tpu.matmul %5, %6, %cst_7 {dimension_numbers = #tpu.dot_dimension_numbers<[1], [0], [0], [1], [0, 0, 1, 1], [], []>} : vector<128x256xbf16>, vector<256x128xbf16>, vector<128x128xf32> -> vector<128x128xf32>
    %c256 = arith.constant 256 : index
    %c0_8 = arith.constant 0 : index
    %8 = vector.load %arg4[%c256, %c0_8] : memref<1120x128xbf16, #tpu.memory_space<vmem>>, vector<1x128xbf16>
    %9 = arith.extf %8 : vector<1x128xbf16> to vector<1x128xf32>
    %10 = vector.broadcast %9 : vector<1x128xf32> to vector<128x128xf32>
    %11 = arith.addf %7, %10 : vector<128x128xf32>
    %cst_9 = arith.constant 0.000000e+00 : f32
    %12 = vector.broadcast %cst_9 : f32 to vector<128x128xf32>
    %13 = arith.maximumf %11, %12 : vector<128x128xf32>
    %14 = arith.truncf %13 : vector<128x128xf32> to vector<128x128xbf16>
    %cst_10 = arith.constant dense<0.000000e+00> : vector<128x128xf32>
    %15 = tpu.matmul %0, %14, %cst_10 {dimension_numbers = #tpu.dot_dimension_numbers<[1], [0], [0], [1], [0, 0, 1, 1], [], []>} : vector<128x128xbf16>, vector<128x128xbf16>, vector<128x128xf32> -> vector<128x128xf32>
    %16 = arith.truncf %15 : vector<128x128xf32> to vector<128x128xbf16>
    %17 = tpu.concatenate %16, %14 in 1 : vector<128x128xbf16>, vector<128x128xbf16> -> vector<128x256xbf16>
    %c272 = arith.constant 272 : index
    %c0_11 = arith.constant 0 : index
    %18 = vector.load %arg4[%c272, %c0_11] : memref<1120x128xbf16, #tpu.memory_space<vmem>>, vector<256x128xbf16>
    %cst_12 = arith.constant dense<0.000000e+00> : vector<128x128xf32>
    %19 = tpu.matmul %17, %18, %cst_12 {dimension_numbers = #tpu.dot_dimension_numbers<[1], [0], [0], [1], [0, 0, 1, 1], [], []>} : vector<128x256xbf16>, vector<256x128xbf16>, vector<128x128xf32> -> vector<128x128xf32>
    %c528 = arith.constant 528 : index
    %c0_13 = arith.constant 0 : index
    %20 = vector.load %arg4[%c528, %c0_13] : memref<1120x128xbf16, #tpu.memory_space<vmem>>, vector<1x128xbf16>
    %21 = arith.extf %20 : vector<1x128xbf16> to vector<1x128xf32>
    %22 = vector.broadcast %21 : vector<1x128xf32> to vector<128x128xf32>
    %23 = arith.addf %19, %22 : vector<128x128xf32>
    %cst_14 = arith.constant 0.000000e+00 : f32
    %24 = vector.broadcast %cst_14 : f32 to vector<128x128xf32>
    %25 = arith.maximumf %23, %24 : vector<128x128xf32>
    %26 = arith.truncf %25 : vector<128x128xf32> to vector<128x128xbf16>
    %cst_15 = arith.constant dense<0.000000e+00> : vector<128x128xf32>
    %27 = tpu.matmul %0, %26, %cst_15 {dimension_numbers = #tpu.dot_dimension_numbers<[1], [0], [0], [1], [0, 0, 1, 1], [], []>} : vector<128x128xbf16>, vector<128x128xbf16>, vector<128x128xf32> -> vector<128x128xf32>
    %28 = arith.truncf %27 : vector<128x128xf32> to vector<128x128xbf16>
    %29 = tpu.concatenate %28, %26 in 1 : vector<128x128xbf16>, vector<128x128xbf16> -> vector<128x256xbf16>
    %c544 = arith.constant 544 : index
    %c0_16 = arith.constant 0 : index
    %30 = vector.load %arg4[%c544, %c0_16] : memref<1120x128xbf16, #tpu.memory_space<vmem>>, vector<256x128xbf16>
    %cst_17 = arith.constant dense<0.000000e+00> : vector<128x128xf32>
    %31 = tpu.matmul %29, %30, %cst_17 {dimension_numbers = #tpu.dot_dimension_numbers<[1], [0], [0], [1], [0, 0, 1, 1], [], []>} : vector<128x256xbf16>, vector<256x128xbf16>, vector<128x128xf32> -> vector<128x128xf32>
    %c800 = arith.constant 800 : index
    %c0_18 = arith.constant 0 : index
    %32 = vector.load %arg4[%c800, %c0_18] : memref<1120x128xbf16, #tpu.memory_space<vmem>>, vector<1x128xbf16>
    %33 = arith.extf %32 : vector<1x128xbf16> to vector<1x128xf32>
    %34 = vector.broadcast %33 : vector<1x128xf32> to vector<128x128xf32>
    %35 = arith.addf %31, %34 : vector<128x128xf32>
    %cst_19 = arith.constant 0.000000e+00 : f32
    %36 = vector.broadcast %cst_19 : f32 to vector<128x128xf32>
    %37 = arith.maximumf %35, %36 : vector<128x128xf32>
    %38 = arith.truncf %37 : vector<128x128xf32> to vector<128x128xbf16>
    %c816 = arith.constant 816 : index
    %c0_20 = arith.constant 0 : index
    %39 = vector.load %arg4[%c816, %c0_20] : memref<1120x128xbf16, #tpu.memory_space<vmem>>, vector<8x128xbf16>
    %cst_21 = arith.constant dense<0.000000e+00> : vector<8x128xf32>
    %40 = tpu.matmul %39, %38, %cst_21 {dimension_numbers = #tpu.dot_dimension_numbers<[1], [1], [0], [0], [0, 0, 1, 0], [], []>} : vector<8x128xbf16>, vector<128x128xbf16>, vector<8x128xf32> -> vector<8x128xf32>
    %c824 = arith.constant 824 : index
    %c0_22 = arith.constant 0 : index
    %41 = vector.load %arg4[%c824, %c0_22] : memref<1120x128xbf16, #tpu.memory_space<vmem>>, vector<1x128xbf16>
    %42 = arith.extf %41 : vector<1x128xbf16> to vector<1x128xf32>
    %43 = vector.extract_strided_slice %42 {offsets = [0, 0], sizes = [1, 1], strides = [1, 1]} : vector<1x128xf32> to vector<1x1xf32>
    %44 = vector.extract_strided_slice %40 {offsets = [0, 0], sizes = [1, 128], strides = [1, 1]} : vector<8x128xf32> to vector<1x128xf32>
    %45 = vector.broadcast %43 : vector<1x1xf32> to vector<1x128xf32>
    %46 = arith.addf %44, %45 : vector<1x128xf32>
    %47 = tpu.iota {dimensions = array<i32: 0>} : vector<8x128xi32>
    %48 = vector.broadcast %1 : vector<1x128xi32> to vector<8x128xi32>
    %49 = arith.cmpi eq, %47, %48 : vector<8x128xi32>
    %cst_23 = arith.constant -1.000000e+30 : f32
    %50 = vector.shape_cast %46 : vector<1x128xf32> to vector<1x128xf32>
    %51 = vector.broadcast %50 : vector<1x128xf32> to vector<8x128xf32>
    %52 = vector.broadcast %cst_23 : f32 to vector<8x128xf32>
    %53 = arith.select %49, %51, %52 : vector<8x128xi1>, vector<8x128xf32>
    %cst_24 = arith.constant dense<0xFF800000> : vector<8xf32>
    %54 = vector.multi_reduction <maximumf>, %53, %cst_24 [1] : vector<8x128xf32> to vector<8xf32>
    %55 = vector.shape_cast %54 : vector<8xf32> to vector<8x1xf32>
    %56 = vector.broadcast %55 : vector<8x1xf32> to vector<8x128xf32>
    %57 = arith.subf %53, %56 : vector<8x128xf32>
    %58 = math.exp %57 : vector<8x128xf32>
    %cst_25 = arith.constant 0.000000e+00 : f32
    %59 = vector.broadcast %cst_25 : f32 to vector<8x128xf32>
    %60 = arith.select %49, %58, %59 : vector<8x128xi1>, vector<8x128xf32>
    %cst_26 = arith.constant dense<0.000000e+00> : vector<8xf32>
    %61 = vector.multi_reduction <add>, %60, %cst_26 [1] : vector<8x128xf32> to vector<8xf32>
    %62 = vector.shape_cast %61 : vector<8xf32> to vector<8x1xf32>
    %cst_27 = arith.constant 1.000000e-30 : f32
    %63 = vector.broadcast %cst_27 : f32 to vector<8x1xf32>
    %64 = arith.maximumf %62, %63 : vector<8x1xf32>
    %65 = tpu.reciprocal %64 {approx = true} : vector<8x1xf32> -> vector<8x1xf32>
    %66 = vector.broadcast %65 : vector<8x1xf32> to vector<8x128xf32>
    %67 = arith.mulf %60, %66 : vector<8x128xf32>
    %68 = arith.truncf %67 : vector<8x128xf32> to vector<8x128xbf16>
    %cst_28 = arith.constant dense<0.000000e+00> : vector<8x128xf32>
    %69 = tpu.matmul %68, %38, %cst_28 {dimension_numbers = #tpu.dot_dimension_numbers<[1], [0], [0], [1], [0, 0, 1, 1], [], []>} : vector<8x128xbf16>, vector<128x128xbf16>, vector<8x128xf32> -> vector<8x128xf32>
    %c832 = arith.constant 832 : index
    %c0_29 = arith.constant 0 : index
    %70 = vector.load %arg4[%c832, %c0_29] : memref<1120x128xbf16, #tpu.memory_space<vmem>>, vector<128x128xbf16>
    %71 = arith.truncf %69 : vector<8x128xf32> to vector<8x128xbf16>
    %cst_30 = arith.constant dense<0.000000e+00> : vector<8x128xf32>
    %72 = tpu.matmul %71, %70, %cst_30 {dimension_numbers = #tpu.dot_dimension_numbers<[1], [0], [0], [1], [0, 0, 1, 1], [], []>} : vector<8x128xbf16>, vector<128x128xbf16>, vector<8x128xf32> -> vector<8x128xf32>
    %c960 = arith.constant 960 : index
    %c0_31 = arith.constant 0 : index
    %73 = vector.load %arg4[%c960, %c0_31] : memref<1120x128xbf16, #tpu.memory_space<vmem>>, vector<1x128xbf16>
    %74 = arith.extf %73 : vector<1x128xbf16> to vector<1x128xf32>
    %75 = vector.broadcast %74 : vector<1x128xf32> to vector<8x128xf32>
    %76 = arith.addf %72, %75 : vector<8x128xf32>
    %cst_32 = arith.constant 0.000000e+00 : f32
    %77 = vector.broadcast %cst_32 : f32 to vector<8x128xf32>
    %78 = arith.maximumf %76, %77 : vector<8x128xf32>
    %c976 = arith.constant 976 : index
    %c0_33 = arith.constant 0 : index
    %79 = vector.load %arg4[%c976, %c0_33] : memref<1120x128xbf16, #tpu.memory_space<vmem>>, vector<128x128xbf16>
    %80 = arith.truncf %78 : vector<8x128xf32> to vector<8x128xbf16>
    %cst_34 = arith.constant dense<0.000000e+00> : vector<8x128xf32>
    %81 = tpu.matmul %80, %79, %cst_34 {dimension_numbers = #tpu.dot_dimension_numbers<[1], [0], [0], [1], [0, 0, 1, 1], [], []>} : vector<8x128xbf16>, vector<128x128xbf16>, vector<8x128xf32> -> vector<8x128xf32>
    %c1104 = arith.constant 1104 : index
    %c0_35 = arith.constant 0 : index
    %82 = vector.load %arg4[%c1104, %c0_35] : memref<1120x128xbf16, #tpu.memory_space<vmem>>, vector<1x128xbf16>
    %83 = arith.extf %82 : vector<1x128xbf16> to vector<1x128xf32>
    %84 = vector.broadcast %83 : vector<1x128xf32> to vector<8x128xf32>
    %85 = arith.addf %81, %84 : vector<8x128xf32>
    %86 = tpu.iota {dimensions = array<i32: 1>} : vector<8x128xi32>
    %c4_i32 = arith.constant 4 : i32
    %87 = vector.broadcast %c4_i32 : i32 to vector<8x128xi32>
    %88 = arith.cmpi slt, %86, %87 : vector<8x128xi32>
    %cst_36 = arith.constant -1.000000e+30 : f32
    %89 = vector.broadcast %cst_36 : f32 to vector<8x128xf32>
    %90 = arith.select %88, %85, %89 : vector<8x128xi1>, vector<8x128xf32>
    %cst_37 = arith.constant dense<0xFF800000> : vector<8xf32>
    %91 = vector.multi_reduction <maximumf>, %90, %cst_37 [1] : vector<8x128xf32> to vector<8xf32>
    %92 = vector.shape_cast %91 : vector<8xf32> to vector<8x1xf32>
    %93 = vector.broadcast %92 : vector<8x1xf32> to vector<8x128xf32>
    %94 = arith.subf %90, %93 : vector<8x128xf32>
    %95 = math.exp %94 : vector<8x128xf32>
    %cst_38 = arith.constant dense<0.000000e+00> : vector<8xf32>
    %96 = vector.multi_reduction <add>, %95, %cst_38 [1] : vector<8x128xf32> to vector<8xf32>
    %97 = vector.shape_cast %96 : vector<8xf32> to vector<8x1xf32>
    %98 = math.log %97 : vector<8x1xf32>
    %99 = vector.broadcast %98 : vector<8x1xf32> to vector<8x128xf32>
    %100 = arith.subf %94, %99 : vector<8x128xf32>
    %c0_39 = arith.constant 0 : index
    %c0_40 = arith.constant 0 : index
    %101 = vector.load %arg5[%c0_39, %c0_40] : memref<8x128xf32, #tpu.memory_space<vmem>>, vector<8x128xf32>
    tpu.vector_store %arg5[%c0_39, %c0_40], %100 {strides = array<i32>} : memref<8x128xf32, #tpu.memory_space<vmem>>, vector<8x128xf32>,
    return
  }
  func.func @transform_0(%arg0: i32) -> (i32, i32) {
    %c0_i32 = arith.constant 0 : i32
    %c0_i32_0 = arith.constant 0 : i32
    %c0_i32_1 = arith.constant 0 : i32
    return %c0_i32, %c0_i32_0 : i32, i32
  }
  func.func @transform_1(%arg0: i32) -> (i32, i32) {
    %c0_i32 = arith.constant 0 : i32
    %c0_i32_0 = arith.constant 0 : i32
    %c0_i32_1 = arith.constant 0 : i32
    return %c0_i32, %c0_i32_0 : i32, i32
  }
  func.func @transform_2(%arg0: i32) -> (i32, i32) {
    %c0_i32 = arith.constant 0 : i32
    %c0_i32_0 = arith.constant 0 : i32
    %c0_i32_1 = arith.constant 0 : i32
    return %c0_i32, %c0_i32_0 : i32, i32
  }
  func.func @transform_3(%arg0: i32) -> (i32, i32) {
    %c0_i32 = arith.constant 0 : i32
    %c0_i32_0 = arith.constant 0 : i32
    %c0_i32_1 = arith.constant 0 : i32
    return %c0_i32, %c0_i32_0 : i32, i32
  }
  func.func @transform_4(%arg0: i32) -> (i32, i32) {
    %c0_i32 = arith.constant 0 : i32
    %c0_i32_0 = arith.constant 0 : i32
    %c0_i32_1 = arith.constant 0 : i32
    return %c0_i32, %c0_i32_0 : i32, i32
  }
}

</mosaic_0001>

<bundles_post_ra>
// kernel: forward.1
= control target key start
LH: loop header
LB: loop body
LE: loop exit
PB: predicated region body
PF: predicated region fallthrough
CT: control target
= control target key end

     0   :  { %9 = vsyncpa [#allocation3], 0  ;;  %s2413_s0 = inlined_call_operand.hbm [shape: bf16[128,128], index: 0, kind: input, shape index: {}]   ;;  %s2414_s1 = inlined_call_operand.hbm [shape: bf16[128,128], index: 1, kind: input, shape index: {}]   ;;  %s2415_s2 = inlined_call_operand.hbm [shape: s32[8,128], index: 2, kind: input, shape index: {}]   ;;  %s2416_s3 = inlined_call_operand.hbm [shape: bf16[1120,128], index: 3, kind: input, shape index: {}]   ;;  %s2417_s4 = inlined_call_operand.vmem [shape: f32[8,128], index: 4, kind: output, shape index: {}]  }
   0x1   :  { %10 = vsyncpa [#allocation5], 0 }
   0x2   :  { %11 = vsyncpa [#allocation8], 0  ;;  %s29_s17 = sshll.u32 %s2414_s1, 4  ;;  %s2195_s18 = smov [#allocation4]   ;;  %s30_s17 = int_to_ptr.hbm [resolvable:$true] %s29_s17 }
   0x3   :  { %s31_s19 = sshll.u32 %s2195_s18, 4  ;;  %s16_s22 = sshll.u32 %s2413_s0, 4  ;;  %s32_s19 = int_to_ptr.vmem [resolvable:$true] %s31_s19  ;;  %s17_s22 = int_to_ptr.hbm [resolvable:$true] %s16_s22 }
   0x4   :  { %s2196_s23 = smov 64   ;;  %s2197_s24 = smov 4  }
   0x5   :  { %37 = dma.hbm_to_vmem [thread:$0]  %s30_s17, 1024, %s32_s19, [#allocation5], %s2196_s23, %s2196_s23, %s2197_s24  }
   0x6   :  { %s2198_s25 = smov [#allocation2]   ;;  %s43_s29 = sshll.u32 %s2415_s2, 4  ;;  %s44_s29 = int_to_ptr.hbm [resolvable:$true] %s43_s29 }
   0x7   :  { %s18_s26 = sshll.u32 %s2198_s25, 4  ;;  %s53_s5 = sshll.u32 %s2416_s3, 4  ;;  %s19_s26 = int_to_ptr.vmem [resolvable:$true] %s18_s26  ;;  %s54_s5 = int_to_ptr.hbm [resolvable:$true] %s53_s5 }
   0x8   :  { %24 = dma.hbm_to_vmem [thread:$0]  %s17_s22, 1024, %s19_s26, [#allocation3], %s2196_s23, %s2196_s23, %s2197_s24  }
   0x9   :  { %s2199_s6 = smov [#allocation6]   ;;  %s2200_s0 = smov [#allocation7]  }
   0xa   :  { %s45_s7 = sshll.u32 %s2199_s6, 4  ;;  %s55_s8 = sshll.u32 %s2200_s0, 4  ;;  %s46_s7 = int_to_ptr.vmem [resolvable:$true] %s45_s7  ;;  %s56_s8 = int_to_ptr.vmem [resolvable:$true] %s55_s8 }
   0xb   :  { %48 = dma.hbm_to_vmem [thread:$0]  %s44_s29, 128, %s46_s7, [#allocation5]  }
   0xc   :  { %61 = dma.hbm_to_vmem [thread:$0]  %s54_s5, 8960, %s56_s8, [#allocation8], %s2196_s23, %s2196_s23, %s2197_s24  }
   0xd   :  { %2189 = dma.done.wait [#allocation3], 1024  }
   0xe   :  { %2190 = vsyncadd [#allocation3], 4294966272 }
   0xf   :  { %2191 = dma.done.wait [#allocation5], 1152  }
  0x10   :  { %2192 = vsyncadd [#allocation5], 4294966144 }
  0x11   :  { %2193 = dma.done.wait [#allocation8], 8960  }
  0x12   :  { %2194 = vsyncadd [#allocation8], 4294958336  ;;  %v2239_v0 = vld [vmem:[#allocation2 + $0x38] sm:$0xff]  ;;  %v2242_v1 = vld [vmem:[#allocation2 + $0x30] sm:$0xff] }
  0x13   :  { %207 = vmatpush.bf16.msra.mxu0 %v2239_v0  ;;  %2055 = vmatpush.bf16.msra.mxu2 %v2239_v0  ;;  %v2247_v2 = vld [vmem:[#allocation2 + $0x28] sm:$0xff]  ;;  %v2252_v3 = vld [vmem:[#allocation2 + $0x20] sm:$0xff]  ;;  %v2257_v4 = vld [vmem:[#allocation2 + $0x18] sm:$0xff] }
  0x14   :  { %2056 = vmatpush.bf16.msra.mxu3 %v2239_v0  ;;  %v2262_v5 = vld [vmem:[#allocation2 + $0x10] sm:$0xff]  ;;  %v1984_v6 = vld [vmem:[#allocation2 + $0x8] sm:$0xff]  ;;  %v1983_v7 = vld [vmem:[#allocation2] sm:$0xff] }
  0x15   :  { %v2269_v8 = vld [vmem:[#allocation4] sm:$0xff]  ;;  %v2272_v9 = vld [vmem:[#allocation4 + $0x8] sm:$0xff]  ;;  %v2277_v11 = vld [vmem:[#allocation4 + $0x30] sm:$0xff] }
  0x16   :  { %v2275_v10 = vld [vmem:[#allocation4 + $0x20] sm:$0xff]  ;;  %v2005_v14 = vld [vmem:[#allocation7 + $0x70] sm:$0xff]  ;;  %v2004_v16 = vld [vmem:[#allocation7 + $0x68] sm:$0xff] }
  0x17   :  { %208 = vmatpush.bf16.msra.mxu0 %v2242_v1  ;;  %2057 = vmatpush.bf16.msra.mxu2 %v2242_v1  ;;  %v2006_v12 = vld [vmem:[#allocation7 + $0x78] sm:$0xff]  ;;  %v1997_v15 = vld [vmem:[#allocation7 + $0x30] sm:$0xff]  ;;  %v1996_v17 = vld [vmem:[#allocation7 + $0x28] sm:$0xff] }
  0x18   :  { %2058 = vmatpush.bf16.msra.mxu3 %v2242_v1  ;;  %v1998_v13 = vld [vmem:[#allocation7 + $0x38] sm:$0xff]  ;;  %v2003_v18 = vld [vmem:[#allocation7 + $0x60] sm:$0xff]  ;;  %v2281_v19 = vld [vmem:[#allocation4 + $0x10] sm:$0xff] }
  0x19   :  { %451 = vmatpush.bf16.msra.mxu1 %v1998_v13  ;;  %v1995_v20 = vld [vmem:[#allocation7 + $0x20] sm:$0xff]  ;;  %v2285_v22 = vld [vmem:[#allocation4 + $0x38] sm:$0xff]  ;;  %v2002_v23 = vld [vmem:[#allocation7 + $0x58] sm:$0xff] }
  0x1a   :  { %v2283_v21 = vld [vmem:[#allocation4 + $0x28] sm:$0xff]  ;;  %v2001_v24 = vld [vmem:[#allocation7 + $0x50] sm:$0xff]  ;;  %v2000_v25 = vld [vmem:[#allocation7 + $0x48] sm:$0xff] }
  0x1b   :  { %209 = vmatpush.bf16.msra.mxu0 %v2247_v2  ;;  %2059 = vmatpush.bf16.msra.mxu2 %v2247_v2  ;;  %v2290_v26 = vld [vmem:[#allocation4 + $0x18] sm:$0xff]  ;;  %v1994_v27 = vld [vmem:[#allocation7 + $0x18] sm:$0xff]  ;;  %v1999_v28 = vld [vmem:[#allocation7 + $0x40] sm:$0xff] }
  0x1c   :  { %2060 = vmatpush.bf16.msra.mxu3 %v2247_v2  ;;  %v1993_v29 = vld [vmem:[#allocation7 + $0x10] sm:$0xff]  ;;  %v1992_v30 = vld [vmem:[#allocation7 + $0x8] sm:$0xff]  ;;  %v1991_v31 = vld [vmem:[#allocation7] sm:$0xff] }
  0x1d   :  { %452 = vmatpush.bf16.msra.mxu1 %v1997_v15 }
  0x1f   :  { %210 = vmatpush.bf16.msra.mxu0 %v2252_v3  ;;  %2061 = vmatpush.bf16.msra.mxu2 %v2252_v3 }
  0x20   :  { %2062 = vmatpush.bf16.msra.mxu3 %v2252_v3 }
  0x21   :  { %453 = vmatpush.bf16.msra.mxu1 %v1996_v17 }
  0x23   :  { %211 = vmatpush.bf16.msra.mxu0 %v2257_v4  ;;  %2063 = vmatpush.bf16.msra.mxu2 %v2257_v4 }
  0x24   :  { %2064 = vmatpush.bf16.msra.mxu3 %v2257_v4 }
  0x25   :  { %454 = vmatpush.bf16.msra.mxu1 %v1995_v20 }
  0x27   :  { %212 = vmatpush.bf16.msra.mxu0 %v2262_v5  ;;  %2065 = vmatpush.bf16.msra.mxu2 %v2262_v5 }
  0x28   :  { %2066 = vmatpush.bf16.msra.mxu3 %v2262_v5 }
  0x29   :  { %455 = vmatpush.bf16.msra.mxu1 %v1994_v27 }
  0x2b   :  { %213 = vmatpush.bf16.msra.mxu0 %v1984_v6  ;;  %2067 = vmatpush.bf16.msra.mxu2 %v1984_v6 }
  0x2c   :  { %2068 = vmatpush.bf16.msra.mxu3 %v1984_v6 }
  0x2d   :  { %456 = vmatpush.bf16.msra.mxu1 %v1993_v29 }
  0x2f   :  { %214 = vmatpush.bf16.msra.mxu0 %v1983_v7  ;;  %2069 = vmatpush.bf16.msra.mxu2 %v1983_v7 }
  0x30   :  { %2070 = vmatpush.bf16.msra.mxu3 %v1983_v7 }
  0x31   :  { %457 = vmatpush.bf16.msra.mxu1 %v1992_v30 }
  0x32   :  { %215 = vmatmul.bf16.vlgmr.msra.gmra.mxu0 %v2269_v8  ;;  %235 = vmatmul.bf16.vlgmr.msra.gmra.mxu2 %v2275_v10 }
  0x33   :  { %245 = vmatmul.bf16.vlgmr.msra.gmra.mxu3 %v2277_v11  ;;  %500 = vmatpush.bf16.msrb.mxu2 %v2006_v12 }
  0x35   :  { %458 = vmatpush.bf16.msra.mxu1 %v1991_v31  ;;  %v2018_v31 = vld [vmem:[#allocation7 + $0xe0] sm:$0xff] }
  0x37   :  { %501 = vmatpush.bf16.msrb.mxu2 %v2005_v14 }
  0x3b   :  { %502 = vmatpush.bf16.msrb.mxu2 %v2004_v16 }
  0x3f   :  { %503 = vmatpush.bf16.msrb.mxu2 %v2003_v18  ;;  %v2022_v18 = vld [vmem:[#allocation7 + $0x100] sm:$0xff] }
  0x40   :  { %922 = vmatpush.bf16.msrb.mxu1 %v2022_v18 }
  0x42   :  { %220 = vmatmul.bf16.gmra.mxu0 %v2272_v9  ;;  %240 = vmatmul.bf16.gmra.mxu2 %v2283_v21 }
  0x43   :  { %250 = vmatmul.bf16.gmra.mxu3 %v2285_v22  ;;  %504 = vmatpush.bf16.msrb.mxu2 %v2002_v23 }
  0x47   :  { %505 = vmatpush.bf16.msrb.mxu2 %v2001_v24  ;;  %v2020_v24 = vld [vmem:[#allocation7 + $0xf0] sm:$0xff] }
  0x4b   :  { %506 = vmatpush.bf16.msrb.mxu2 %v2000_v25 }
  0x4f   :  { %507 = vmatpush.bf16.msrb.mxu2 %v1999_v28 }
  0x52   :  { %225 = vmatmul.bf16.gmra.mxu0 %v2281_v19  ;;  %508 = vmatmul.bf16.vlgmr.msrb.gmra.mxu2 %v1983_v7 }
  0x62   :  { %230 = vmatmul.bf16.gmra.mxu0 %v2290_v26  ;;  %513 = vmatmul.bf16.gmra.mxu2 %v1984_v6 }
  0x72   :  { %518 = vmatmul.bf16.gmra.mxu2 %v2262_v5 }
  0x82   :  { %523 = vmatmul.bf16.gmra.mxu2 %v2257_v4 }
  0x92   :  { %528 = vmatmul.bf16.gmra.mxu2 %v2252_v3 }
  0xa2   :  { %533 = vmatmul.bf16.gmra.mxu2 %v2247_v2 }
  0xaf   :  { %v216_v32 = vpop.f32.mrf.mxu0 }
  0xb0   :  { %v256_v33 = vpack.c.bf16 %v216_v32, %v216_v32 }
  0xb2   :  { %v288_v36 = vunpack.c.l.b16 %v256_v33  ;;  %538 = vmatmul.bf16.gmra.mxu2 %v2242_v1  ;;  %v2021_v1 = vld [vmem:[#allocation7 + $0xf8] sm:$0xff] }
  0xb3   :  { %923 = vmatpush.bf16.msrb.mxu1 %v2021_v1  ;;  %v2017_v33 = vld [vmem:[#allocation7 + $0xd8] sm:$0xff] }
  0xb5   :  { %v236_v54 = vpop.f32.mrf.mxu2 }
  0xb6   :  { %v264_v62 = vpack.c.bf16 %v236_v54, %v236_v54  ;;  %v246_v2 = vpop.f32.mrf.mxu3 }
  0xb7   :  { %v218_v34 = vpop.f32.mrf.mxu0  ;;  %v268_v20 = vpack.c.bf16 %v246_v2, %v246_v2  ;;  %924 = vmatpush.bf16.msrb.mxu1 %v2020_v24 }
  0xb8   :  { %v257_v35 = vpack.c.bf16 %v218_v34, %v218_v34  ;;  %v296_v4 = vunpack.c.l.b16 %v264_v62 }
  0xb9   :  { %v300_v27 = vunpack.c.l.b16 %v268_v20 }
  0xba   :  { %v289_v37 = vunpack.c.l.b16 %v257_v35 }
  0xbc   :  { %v304_v38 = vpack.c.b16 %v289_v37, %v288_v36  ;;  %v2016_v36 = vld [vmem:[#allocation7 + $0xd0] sm:$0xff] }
  0xbd   :  { %v238_v61 = vpop.f32.mrf.mxu2 }
  0xbe   :  { %459 = vmatmul.bf16.vlgmr.msra.gmra.mxu1 %v304_v38  ;;  %v265_v63 = vpack.c.bf16 %v238_v61, %v238_v61  ;;  %v248_v17 = vpop.f32.mrf.mxu3 }
  0xbf   :  { %v221_v39 = vpop.f32.mrf.mxu0  ;;  %v269_v23 = vpack.c.bf16 %v248_v17, %v248_v17 }
  0xc0   :  { %v258_v40 = vpack.c.bf16 %v221_v39, %v221_v39  ;;  %v297_v5 = vunpack.c.l.b16 %v265_v63 }
  0xc1   :  { %v301_v28 = vunpack.c.l.b16 %v269_v23 }
  0xc2   :  { %v290_v43 = vunpack.c.l.b16 %v258_v40  ;;  %v308_v6 = vpack.c.b16 %v297_v5, %v296_v4  ;;  %543 = vmatmul.bf16.gmra.mxu2 %v2239_v0  ;;  %v2019_v0 = vld [vmem:[#allocation7 + $0xe8] sm:$0xff] }
  0xc3   :  { %v310_v29 = vpack.c.b16 %v301_v28, %v300_v27  ;;  %925 = vmatpush.bf16.msrb.mxu1 %v2019_v0  ;;  %v2015_v40 = vld [vmem:[#allocation7 + $0xc8] sm:$0xff] }
  0xc5   :  { %v241_v3 = vpop.f32.mrf.mxu2 }
  0xc6   :  { %v266_v12 = vpack.c.bf16 %v241_v3, %v241_v3  ;;  %v251_v25 = vpop.f32.mrf.mxu3 }
  0xc7   :  { %v223_v41 = vpop.f32.mrf.mxu0  ;;  %926 = vmatpush.bf16.msrb.mxu1 %v2018_v31  ;;  %v270_v34 = vpack.c.bf16 %v251_v25, %v251_v25 }
  0xc8   :  { %v259_v42 = vpack.c.bf16 %v223_v41, %v223_v41  ;;  %v298_v14 = vunpack.c.l.b16 %v266_v12 }
  0xc9   :  { %v302_v37 = vunpack.c.l.b16 %v270_v34 }
  0xca   :  { %v291_v44 = vunpack.c.l.b16 %v259_v42  ;;  %v352_v42 = vld [vmem:[#allocation7 + $0x80] sm:$0x1] }
  0xcb   :  { %927 = vmatpush.bf16.msrb.mxu1 %v2017_v33 }
  0xcc   :  { %v305_v45 = vpack.c.b16 %v291_v44, %v290_v43  ;;  %v353_v44 = vunpack.c.l.bf16 %v352_v42 }
  0xcd   :  { %v243_v7 = vpop.f32.mrf.mxu2 }
  0xce   :  { %464 = vmatmul.bf16.gmra.mxu1 %v305_v45  ;;  %v267_v13 = vpack.c.bf16 %v243_v7, %v243_v7  ;;  %v253_v32 = vpop.f32.mrf.mxu3  ;;  %v2299_v45 = vperm.slane %v353_v44, 0 }
  0xcf   :  { %v226_v46 = vpop.f32.mrf.mxu0  ;;  %v271_v35 = vpack.c.bf16 %v253_v32, %v253_v32  ;;  %928 = vmatpush.bf16.msrb.mxu1 %v2016_v36 }
  0xd0   :  { %v260_v47 = vpack.c.bf16 %v226_v46, %v226_v46  ;;  %v299_v15 = vunpack.c.l.b16 %v267_v13 }
  0xd1   :  { %v303_v38 = vunpack.c.l.b16 %v271_v35 }
  0xd2   :  { %v292_v50 = vunpack.c.l.b16 %v260_v47  ;;  %v309_v16 = vpack.c.b16 %v299_v15, %v298_v14 }
  0xd3   :  { %v311_v41 = vpack.c.b16 %v303_v38, %v302_v37  ;;  %929 = vmatpush.bf16.msrb.mxu1 %v2015_v40 }
  0xd5   :  { %v509_v30 = vpop.f32.mrf.mxu2 }
  0xd7   :  { %v228_v48 = vpop.f32.mrf.mxu0 }
  0xd8   :  { %v261_v49 = vpack.c.bf16 %v228_v48, %v228_v48 }
  0xda   :  { %v293_v51 = vunpack.c.l.b16 %v261_v49 }
  0xdc   :  { %v306_v52 = vpack.c.b16 %v293_v51, %v292_v50 }
  0xdd   :  { %v511_v39 = vpop.f32.mrf.mxu2 }
  0xde   :  { %469 = vmatmul.bf16.gmra.mxu1 %v306_v52 }
  0xdf   :  { %v231_v53 = vpop.f32.mrf.mxu0 }
  0xe0   :  { %v262_v55 = vpack.c.bf16 %v231_v53, %v231_v53 }
  0xe2   :  { %v294_v58 = vunpack.c.l.b16 %v262_v55 }
  0xe5   :  { %v514_v43 = vpop.f32.mrf.mxu2 }
  0xe7   :  { %v233_v56 = vpop.f32.mrf.mxu0 }
  0xe8   :  { %v263_v57 = vpack.c.bf16 %v233_v56, %v233_v56 }
  0xea   :  { %v295_v59 = vunpack.c.l.b16 %v263_v57 }
  0xec   :  { %v307_v60 = vpack.c.b16 %v295_v59, %v294_v58 }
  0xed   :  { %v516_v48 = vpop.f32.mrf.mxu2 }
  0xee   :  { %474 = vmatmul.bf16.gmra.mxu1 %v307_v60 }
  0xf5   :  { %v519_v54 = vpop.f32.mrf.mxu2 }
  0xfd   :  { %v521_v3 = vpop.f32.mrf.mxu2 }
  0xfe   :  { %479 = vmatmul.bf16.gmra.mxu1 %v308_v6 }
 0x105   :  { %v524_v15 = vpop.f32.mrf.mxu2 }
 0x10d   :  { %v526_v27 = vpop.f32.mrf.mxu2 }
 0x10e   :  { %484 = vmatmul.bf16.gmra.mxu1 %v309_v16 }
 0x115   :  { %v529_v36 = vpop.f32.mrf.mxu2 }
 0x11d   :  { %v531_v44 = vpop.f32.mrf.mxu2 }
 0x11e   :  { %489 = vmatmul.bf16.gmra.mxu1 %v310_v29 }
 0x12e   :  { %494 = vmatmul.bf16.gmra.mxu1 %v311_v41 }
 0x13b   :  { %v460_v46 = vpop.f32.mrf.mxu1 }
 0x13c   :  { %v461_v47 = vadd.f32 %v460_v46, %v2299_v45 }
 0x13e   :  { %v510_v49 = vadd.f32 %v509_v30, %v461_v47 }
 0x140   :  { %v549_v51 = vmax.f32 %v510_v49, 0.0 }
 0x142   :  { %v565_v55 = vpack.c.bf16 %v549_v51, %v549_v51 }
 0x143   :  { %v462_v50 = vpop.f32.mrf.mxu1 }
 0x144   :  { %v463_v52 = vadd.f32 %v462_v50, %v2299_v45  ;;  %v597_v59 = vunpack.c.l.b16 %v565_v55 }
 0x146   :  { %v512_v53 = vadd.f32 %v511_v39, %v463_v52 }
 0x148   :  { %v550_v56 = vmax.f32 %v512_v53, 0.0 }
 0x14a   :  { %v566_v57 = vpack.c.bf16 %v550_v56, %v550_v56 }
 0x14b   :  { %v465_v58 = vpop.f32.mrf.mxu1 }
 0x14c   :  { %v598_v60 = vunpack.c.l.b16 %v566_v57  ;;  %v466_v61 = vadd.f32 %v465_v58, %v2299_v45 }
 0x14e   :  { %v2304_v62 = vpack.c.b16 %v598_v60, %v597_v59  ;;  %v515_v63 = vadd.f32 %v514_v43, %v466_v61 }
 0x150   :  { %930 = vmatmul.bf16.vlgmr.msrb.gmra.mxu1 %v2304_v62  ;;  %v551_v5 = vmax.f32 %v515_v63, 0.0 }
 0x152   :  { %v567_v2 = vpack.c.bf16 %v551_v5, %v551_v5 }
 0x153   :  { %v467_v4 = vpop.f32.mrf.mxu1 }
 0x154   :  { %v468_v6 = vadd.f32 %v467_v4, %v2299_v45  ;;  %v599_v17 = vunpack.c.l.b16 %v567_v2 }
 0x156   :  { %v517_v7 = vadd.f32 %v516_v48, %v468_v6 }
 0x158   :  { %v552_v12 = vmax.f32 %v517_v7, 0.0 }
 0x15a   :  { %v568_v13 = vpack.c.bf16 %v552_v12, %v552_v12 }
 0x15b   :  { %v470_v14 = vpop.f32.mrf.mxu1 }
 0x15c   :  { %v471_v16 = vadd.f32 %v470_v14, %v2299_v45  ;;  %v600_v18 = vunpack.c.l.b16 %v568_v13 }
 0x15e   :  { %v2309_v1 = vpack.c.b16 %v600_v18, %v599_v17  ;;  %v520_v20 = vadd.f32 %v519_v54, %v471_v16  ;;  %v534_v54 = vpop.f32.mrf.mxu2 }
 0x160   :  { %935 = vmatmul.bf16.gmra.mxu1 %v2309_v1  ;;  %v553_v24 = vmax.f32 %v520_v20, 0.0 }
 0x162   :  { %v569_v0 = vpack.c.bf16 %v553_v24, %v553_v24 }
 0x163   :  { %v472_v23 = vpop.f32.mrf.mxu1 }
 0x164   :  { %v473_v25 = vadd.f32 %v472_v23, %v2299_v45  ;;  %v601_v33 = vunpack.c.l.b16 %v569_v0 }
 0x166   :  { %v522_v28 = vadd.f32 %v521_v3, %v473_v25  ;;  %v536_v5 = vpop.f32.mrf.mxu2 }
 0x168   :  { %v554_v29 = vmax.f32 %v522_v28, 0.0 }
 0x16a   :  { %v570_v30 = vpack.c.bf16 %v554_v29, %v554_v29 }
 0x16b   :  { %v475_v31 = vpop.f32.mrf.mxu1 }
 0x16c   :  { %v476_v32 = vadd.f32 %v475_v31, %v2299_v45  ;;  %v602_v34 = vunpack.c.l.b16 %v570_v30 }
 0x16e   :  { %v2314_v35 = vpack.c.b16 %v602_v34, %v601_v33  ;;  %v525_v37 = vadd.f32 %v524_v15, %v476_v32  ;;  %v539_v15 = vpop.f32.mrf.mxu2 }
 0x170   :  { %940 = vmatmul.bf16.gmra.mxu1 %v2314_v35  ;;  %v555_v39 = vmax.f32 %v525_v37, 0.0 }
 0x172   :  { %v571_v42 = vpack.c.bf16 %v555_v39, %v555_v39 }
 0x173   :  { %v477_v38 = vpop.f32.mrf.mxu1 }
 0x174   :  { %v478_v40 = vadd.f32 %v477_v38, %v2299_v45  ;;  %v603_v49 = vunpack.c.l.b16 %v571_v42 }
 0x176   :  { %v527_v41 = vadd.f32 %v526_v27, %v478_v40  ;;  %v541_v0 = vpop.f32.mrf.mxu2 }
 0x178   :  { %v556_v43 = vmax.f32 %v527_v41, 0.0 }
 0x17a   :  { %v572_v46 = vpack.c.bf16 %v556_v43, %v556_v43 }
 0x17b   :  { %v480_v47 = vpop.f32.mrf.mxu1 }
 0x17c   :  { %v481_v48 = vadd.f32 %v480_v47, %v2299_v45  ;;  %v604_v50 = vunpack.c.l.b16 %v572_v46 }
 0x17e   :  { %v2319_v51 = vpack.c.b16 %v604_v50, %v603_v49  ;;  %v530_v52 = vadd.f32 %v529_v36, %v481_v48  ;;  %v544_v37 = vpop.f32.mrf.mxu2 }
 0x180   :  { %945 = vmatmul.bf16.gmra.mxu1 %v2319_v51  ;;  %v557_v55 = vmax.f32 %v530_v52, 0.0 }
 0x182   :  { %v573_v58 = vpack.c.bf16 %v557_v55, %v557_v55 }
 0x183   :  { %v482_v53 = vpop.f32.mrf.mxu1 }
 0x184   :  { %v483_v56 = vadd.f32 %v482_v53, %v2299_v45  ;;  %v605_v63 = vunpack.c.l.b16 %v573_v58 }
 0x186   :  { %v532_v57 = vadd.f32 %v531_v44, %v483_v56  ;;  %v546_v48 = vpop.f32.mrf.mxu2 }
 0x188   :  { %v558_v59 = vmax.f32 %v532_v57, 0.0  ;;  %v2007_v57 = vld [vmem:[#allocation7 + $0x88] sm:$0xff] }
 0x18a   :  { %v574_v60 = vpack.c.bf16 %v558_v59, %v558_v59 }
 0x18b   :  { %v485_v61 = vpop.f32.mrf.mxu1 }
 0x18c   :  { %v606_v3 = vunpack.c.l.b16 %v574_v60  ;;  %v486_v4 = vadd.f32 %v485_v61, %v2299_v45 }
 0x18e   :  { %v617_v6 = vpack.c.b16 %v606_v3, %v605_v63  ;;  %v535_v7 = vadd.f32 %v534_v54, %v486_v4 }
 0x190   :  { %950 = vmatmul.bf16.gmra.mxu1 %v617_v6  ;;  %v559_v12 = vmax.f32 %v535_v7, 0.0 }
 0x192   :  { %v575_v16 = vpack.c.bf16 %v559_v12, %v559_v12 }
 0x193   :  { %v487_v2 = vpop.f32.mrf.mxu1 }
 0x194   :  { %v488_v13 = vadd.f32 %v487_v2, %v2299_v45  ;;  %v607_v23 = vunpack.c.l.b16 %v575_v16 }
 0x196   :  { %v537_v14 = vadd.f32 %v536_v5, %v488_v13 }
 0x198   :  { %v560_v17 = vmax.f32 %v537_v14, 0.0 }
 0x19a   :  { %v576_v18 = vpack.c.bf16 %v560_v17, %v560_v17 }
 0x19b   :  { %v490_v20 = vpop.f32.mrf.mxu1 }
 0x19c   :  { %v608_v24 = vunpack.c.l.b16 %v576_v18  ;;  %v491_v25 = vadd.f32 %v490_v20, %v2299_v45 }
 0x19e   :  { %v618_v27 = vpack.c.b16 %v608_v24, %v607_v23  ;;  %v540_v28 = vadd.f32 %v539_v15, %v491_v25 }
 0x1a0   :  { %955 = vmatmul.bf16.gmra.mxu1 %v618_v27  ;;  %v561_v30 = vmax.f32 %v540_v28, 0.0 }
 0x1a2   :  { %v577_v33 = vpack.c.bf16 %v561_v30, %v561_v30 }
 0x1a3   :  { %v492_v29 = vpop.f32.mrf.mxu1 }
 0x1a4   :  { %v493_v31 = vadd.f32 %v492_v29, %v2299_v45  ;;  %v609_v39 = vunpack.c.l.b16 %v577_v33 }
 0x1a6   :  { %v542_v32 = vadd.f32 %v541_v0, %v493_v31 }
 0x1a8   :  { %v562_v34 = vmax.f32 %v542_v32, 0.0 }
 0x1aa   :  { %v578_v36 = vpack.c.bf16 %v562_v34, %v562_v34 }
 0x1ab   :  { %v495_v38 = vpop.f32.mrf.mxu1 }
 0x1ac   :  { %v610_v40 = vunpack.c.l.b16 %v578_v36  ;;  %v496_v41 = vadd.f32 %v495_v38, %v2299_v45 }
 0x1ae   :  { %v619_v42 = vpack.c.b16 %v610_v40, %v609_v39  ;;  %v545_v43 = vadd.f32 %v544_v37, %v496_v41 }
 0x1b0   :  { %960 = vmatmul.bf16.gmra.mxu1 %v619_v42  ;;  %v563_v46 = vmax.f32 %v545_v43, 0.0 }
 0x1b2   :  { %v579_v50 = vpack.c.bf16 %v563_v46, %v563_v46 }
 0x1b3   :  { %v497_v44 = vpop.f32.mrf.mxu1 }
 0x1b4   :  { %v498_v47 = vadd.f32 %v497_v44, %v2299_v45  ;;  %v611_v54 = vunpack.c.l.b16 %v579_v50  ;;  %v2014_v45 = vld [vmem:[#allocation7 + $0xc0] sm:$0xff]  ;;  %v2038_v44 = vld [vmem:[#allocation7 + $0x188] sm:$0xff] }
 0x1b5   :  { %873 = vmatpush.bf16.msrb.mxu0 %v2014_v45 }
 0x1b6   :  { %v547_v49 = vadd.f32 %v546_v48, %v498_v47  ;;  %v2037_v47 = vld [vmem:[#allocation7 + $0x180] sm:$0xff]  ;;  %v2036_v48 = vld [vmem:[#allocation7 + $0x178] sm:$0xff] }
 0x1b8   :  { %v564_v52 = vmax.f32 %v547_v49, 0.0 }
 0x1ba   :  { %v580_v53 = vpack.c.bf16 %v564_v52, %v564_v52 }
 0x1bc   :  { %v612_v55 = vunpack.c.l.b16 %v580_v53 }
 0x1be   :  { %v620_v56 = vpack.c.b16 %v612_v55, %v611_v54  ;;  %v2035_v55 = vld [vmem:[#allocation7 + $0x170] sm:$0xff] }
 0x1c0   :  { %629 = vmatpush.bf16.msrb.mxu3 %v620_v56  ;;  %965 = vmatmul.bf16.gmra.mxu1 %v620_v56 }
 0x1c4   :  { %630 = vmatpush.bf16.msrb.mxu3 %v619_v42 }
 0x1c8   :  { %631 = vmatpush.bf16.msrb.mxu3 %v618_v27 }
 0x1cc   :  { %632 = vmatpush.bf16.msrb.mxu3 %v617_v6 }
 0x1cd   :  { %v931_v45 = vpop.f32.mrf.mxu1 }
 0x1d0   :  { %633 = vmatpush.bf16.msrb.mxu3 %v2319_v51  ;;  %v2013_v51 = vld [vmem:[#allocation7 + $0xb8] sm:$0xff] }
 0x1d1   :  { %874 = vmatpush.bf16.msrb.mxu0 %v2013_v51 }
 0x1d4   :  { %634 = vmatpush.bf16.msrb.mxu3 %v2314_v35  ;;  %v2012_v35 = vld [vmem:[#allocation7 + $0xb0] sm:$0xff] }
 0x1d5   :  { %875 = vmatpush.bf16.msrb.mxu0 %v2012_v35  ;;  %v2034_v35 = vld [vmem:[#allocation7 + $0x168] sm:$0xff] }
 0x1d8   :  { %635 = vmatpush.bf16.msrb.mxu3 %v2309_v1  ;;  %v2011_v1 = vld [vmem:[#allocation7 + $0xa8] sm:$0xff] }
 0x1d9   :  { %876 = vmatpush.bf16.msrb.mxu0 %v2011_v1  ;;  %v2033_v1 = vld [vmem:[#allocation7 + $0x160] sm:$0xff] }
 0x1dc   :  { %636 = vmatpush.bf16.msrb.mxu3 %v2304_v62  ;;  %v2008_v62 = vld [vmem:[#allocation7 + $0x90] sm:$0xff] }
 0x1df   :  { %637 = vmatmul.bf16.vlgmr.msrb.gmra.mxu3 %v2269_v8  ;;  %v2010_v8 = vld [vmem:[#allocation7 + $0xa0] sm:$0xff] }
 0x1e0   :  { %877 = vmatpush.bf16.msrb.mxu0 %v2010_v8 }
 0x1ef   :  { %642 = vmatmul.bf16.gmra.mxu3 %v2272_v9  ;;  %v2009_v9 = vld [vmem:[#allocation7 + $0x98] sm:$0xff] }
 0x1f0   :  { %878 = vmatpush.bf16.msrb.mxu0 %v2009_v9 }
 0x1f4   :  { %879 = vmatpush.bf16.msrb.mxu0 %v2008_v62  ;;  %v2032_v62 = vld [vmem:[#allocation7 + $0x158] sm:$0xff] }
 0x1f8   :  { %880 = vmatpush.bf16.msrb.mxu0 %v2007_v57 }
 0x1fc   :  { %1344 = vmatpush.bf16.msra.mxu0 %v2038_v44 }
 0x1ff   :  { %647 = vmatmul.bf16.gmra.mxu3 %v2281_v19 }
 0x200   :  { %1345 = vmatpush.bf16.msra.mxu0 %v2037_v47 }
 0x204   :  { %1346 = vmatpush.bf16.msra.mxu0 %v2036_v48 }
 0x208   :  { %1347 = vmatpush.bf16.msra.mxu0 %v2035_v55 }
 0x20c   :  { %1348 = vmatpush.bf16.msra.mxu0 %v2034_v35 }
 0x20f   :  { %652 = vmatmul.bf16.gmra.mxu3 %v2290_v26 }
 0x210   :  { %1349 = vmatpush.bf16.msra.mxu0 %v2033_v1 }
 0x214   :  { %1350 = vmatpush.bf16.msra.mxu0 %v2032_v62 }
 0x21f   :  { %657 = vmatmul.bf16.gmra.mxu3 %v2275_v10 }
 0x22f   :  { %662 = vmatmul.bf16.gmra.mxu3 %v2283_v21 }
 0x23f   :  { %667 = vmatmul.bf16.gmra.mxu3 %v2277_v11 }
 0x24f   :  { %672 = vmatmul.bf16.gmra.mxu3 %v2285_v22 }
 0x262   :  { %v638_v10 = vpop.f32.mrf.mxu3 }
 0x263   :  { %v678_v58 = vpack.c.bf16 %v638_v10, %v638_v10  ;;  %v933_v10 = vpop.f32.mrf.mxu1 }
 0x265   :  { %v710_v61 = vunpack.c.l.b16 %v678_v58 }
 0x26a   :  { %v640_v59 = vpop.f32.mrf.mxu3 }
 0x26b   :  { %v679_v60 = vpack.c.bf16 %v640_v59, %v640_v59 }
 0x26d   :  { %v711_v63 = vunpack.c.l.b16 %v679_v60  ;;  %v2031_v60 = vld [vmem:[#allocation7 + $0x150] sm:$0xff] }
 0x26e   :  { %1351 = vmatpush.bf16.msra.mxu0 %v2031_v60 }
 0x26f   :  { %v726_v3 = vpack.c.b16 %v711_v63, %v710_v61  ;;  %v774_v63 = vld [vmem:[#allocation7 + $0x108] sm:$0x1] }
 0x271   :  { %881 = vmatmul.bf16.vlgmr.msrb.gmra.mxu0 %v726_v3  ;;  %v936_v3 = vpop.f32.mrf.mxu1 }
 0x272   :  { %v643_v4 = vpop.f32.mrf.mxu3 }
 0x273   :  { %v680_v11 = vpack.c.bf16 %v643_v4, %v643_v4  ;;  %v775_v4 = vunpack.c.l.bf16 %v774_v63 }
 0x275   :  { %v712_v7 = vunpack.c.l.b16 %v680_v11  ;;  %v2341_v11 = vperm.slane %v775_v4, 0 }
 0x27a   :  { %v645_v5 = vpop.f32.mrf.mxu3 }
 0x27b   :  { %v681_v6 = vpack.c.bf16 %v645_v5, %v645_v5 }
 0x27d   :  { %v713_v2 = vunpack.c.l.b16 %v681_v6 }
 0x27f   :  { %v727_v12 = vpack.c.b16 %v713_v2, %v712_v7  ;;  %v938_v7 = vpop.f32.mrf.mxu1 }
 0x281   :  { %886 = vmatmul.bf16.gmra.mxu0 %v727_v12 }
 0x282   :  { %v648_v13 = vpop.f32.mrf.mxu3 }
 0x283   :  { %v682_v14 = vpack.c.bf16 %v648_v13, %v648_v13 }
 0x285   :  { %v714_v16 = vunpack.c.l.b16 %v682_v14 }
 0x28a   :  { %v650_v15 = vpop.f32.mrf.mxu3 }
 0x28b   :  { %v683_v22 = vpack.c.bf16 %v650_v15, %v650_v15 }
 0x28d   :  { %v715_v17 = vunpack.c.l.b16 %v683_v22  ;;  %v941_v22 = vpop.f32.mrf.mxu1 }
 0x28f   :  { %v728_v18 = vpack.c.b16 %v715_v17, %v714_v16 }
 0x291   :  { %891 = vmatmul.bf16.gmra.mxu0 %v728_v18 }
 0x292   :  { %v653_v20 = vpop.f32.mrf.mxu3 }
 0x293   :  { %v684_v23 = vpack.c.bf16 %v653_v20, %v653_v20 }
 0x295   :  { %v716_v27 = vunpack.c.l.b16 %v684_v23 }
 0x29a   :  { %v655_v24 = vpop.f32.mrf.mxu3 }
 0x29b   :  { %v685_v25 = vpack.c.bf16 %v655_v24, %v655_v24 }
 0x29d   :  { %v717_v28 = vunpack.c.l.b16 %v685_v25 }
 0x29f   :  { %v729_v0 = vpack.c.b16 %v717_v28, %v716_v27 }
 0x2a1   :  { %896 = vmatmul.bf16.gmra.mxu0 %v729_v0  ;;  %v943_v0 = vpop.f32.mrf.mxu1 }
 0x2a2   :  { %v658_v29 = vpop.f32.mrf.mxu3 }
 0x2a3   :  { %v686_v30 = vpack.c.bf16 %v658_v29, %v658_v29 }
 0x2a5   :  { %v718_v33 = vunpack.c.l.b16 %v686_v30 }
 0x2aa   :  { %v660_v31 = vpop.f32.mrf.mxu3 }
 0x2ab   :  { %v687_v32 = vpack.c.bf16 %v660_v31, %v660_v31 }
 0x2ad   :  { %v719_v34 = vunpack.c.l.b16 %v687_v32 }
 0x2af   :  { %v730_v36 = vpack.c.b16 %v719_v34, %v718_v33 }
 0x2b1   :  { %901 = vmatmul.bf16.gmra.mxu0 %v730_v36 }
 0x2b2   :  { %v663_v37 = vpop.f32.mrf.mxu3 }
 0x2b3   :  { %v688_v38 = vpack.c.bf16 %v663_v37, %v663_v37  ;;  %v946_v37 = vpop.f32.mrf.mxu1 }
 0x2b5   :  { %v720_v41 = vunpack.c.l.b16 %v688_v38 }
 0x2ba   :  { %v665_v39 = vpop.f32.mrf.mxu3 }
 0x2bb   :  { %v689_v40 = vpack.c.bf16 %v665_v39, %v665_v39  ;;  %v948_v48 = vpop.f32.mrf.mxu1 }
 0x2bd   :  { %v721_v42 = vunpack.c.l.b16 %v689_v40 }
 0x2bf   :  { %v731_v43 = vpack.c.b16 %v721_v42, %v720_v41 }
 0x2c1   :  { %906 = vmatmul.bf16.gmra.mxu0 %v731_v43 }
 0x2c2   :  { %v668_v46 = vpop.f32.mrf.mxu3 }
 0x2c3   :  { %v690_v49 = vpack.c.bf16 %v668_v46, %v668_v46  ;;  %v951_v35 = vpop.f32.mrf.mxu1 }
 0x2c5   :  { %v722_v53 = vunpack.c.l.b16 %v690_v49 }
 0x2ca   :  { %v670_v50 = vpop.f32.mrf.mxu3 }
 0x2cb   :  { %v691_v52 = vpack.c.bf16 %v670_v50, %v670_v50 }
 0x2cd   :  { %v723_v54 = vunpack.c.l.b16 %v691_v52 }
 0x2cf   :  { %v732_v56 = vpack.c.b16 %v723_v54, %v722_v53 }
 0x2d1   :  { %911 = vmatmul.bf16.gmra.mxu0 %v732_v56 }
 0x2d2   :  { %v673_v51 = vpop.f32.mrf.mxu3 }
 0x2d3   :  { %v692_v8 = vpack.c.bf16 %v673_v51, %v673_v51 }
 0x2d5   :  { %v724_v58 = vunpack.c.l.b16 %v692_v8 }
 0x2da   :  { %v675_v9 = vpop.f32.mrf.mxu3 }
 0x2db   :  { %v693_v57 = vpack.c.bf16 %v675_v9, %v675_v9 }
 0x2dd   :  { %v725_v59 = vunpack.c.l.b16 %v693_v57 }
 0x2df   :  { %v733_v61 = vpack.c.b16 %v725_v59, %v724_v58  ;;  %v953_v59 = vpop.f32.mrf.mxu1 }
 0x2e1   :  { %916 = vmatmul.bf16.gmra.mxu0 %v733_v61 }
 0x2ee   :  { %v882_v5 = vpop.f32.mrf.mxu0 }
 0x2ef   :  { %v883_v6 = vadd.f32 %v882_v5, %v2341_v11 }
 0x2f1   :  { %v932_v2 = vadd.f32 %v931_v45, %v883_v6 }
 0x2f3   :  { %v971_v13 = vmax.f32 %v932_v2, 0.0 }
 0x2f5   :  { %v987_v16 = vpack.c.bf16 %v971_v13, %v971_v13 }
 0x2f6   :  { %v884_v12 = vpop.f32.mrf.mxu0 }
 0x2f7   :  { %v885_v14 = vadd.f32 %v884_v12, %v2341_v11  ;;  %v1019_v23 = vunpack.c.l.b16 %v987_v16 }
 0x2f9   :  { %v934_v15 = vadd.f32 %v933_v10, %v885_v14 }
 0x2fb   :  { %v972_v17 = vmax.f32 %v934_v15, 0.0 }
 0x2fd   :  { %v988_v18 = vpack.c.bf16 %v972_v17, %v972_v17 }
 0x2fe   :  { %v887_v20 = vpop.f32.mrf.mxu0 }
 0x2ff   :  { %v1020_v24 = vunpack.c.l.b16 %v988_v18  ;;  %v888_v25 = vadd.f32 %v887_v20, %v2341_v11 }
 0x301   :  { %v2346_v27 = vpack.c.b16 %v1020_v24, %v1019_v23  ;;  %v937_v28 = vadd.f32 %v936_v3, %v888_v25 }
 0x303   :  { %1352 = vmatmul.bf16.vlgmr.msra.gmra.mxu0 %v2346_v27  ;;  %v973_v30 = vmax.f32 %v937_v28, 0.0 }
 0x305   :  { %v989_v33 = vpack.c.bf16 %v973_v30, %v973_v30 }
 0x306   :  { %v889_v29 = vpop.f32.mrf.mxu0 }
 0x307   :  { %v890_v31 = vadd.f32 %v889_v29, %v2341_v11  ;;  %v1021_v39 = vunpack.c.l.b16 %v989_v33 }
 0x309   :  { %v939_v32 = vadd.f32 %v938_v7, %v890_v31  ;;  %v956_v7 = vpop.f32.mrf.mxu1 }
 0x30b   :  { %v974_v34 = vmax.f32 %v939_v32, 0.0 }
 0x30d   :  { %v990_v36 = vpack.c.bf16 %v974_v34, %v974_v34 }
 0x30e   :  { %v892_v38 = vpop.f32.mrf.mxu0 }
 0x30f   :  { %v1022_v40 = vunpack.c.l.b16 %v990_v36  ;;  %v893_v41 = vadd.f32 %v892_v38, %v2341_v11 }
 0x311   :  { %v2351_v42 = vpack.c.b16 %v1022_v40, %v1021_v39  ;;  %v942_v43 = vadd.f32 %v941_v22, %v893_v41  ;;  %v958_v24 = vpop.f32.mrf.mxu1 }
 0x313   :  { %1357 = vmatmul.bf16.gmra.mxu0 %v2351_v42  ;;  %v975_v46 = vmax.f32 %v942_v43, 0.0 }
 0x315   :  { %v991_v50 = vpack.c.bf16 %v975_v46, %v975_v46 }
 0x316   :  { %v894_v44 = vpop.f32.mrf.mxu0 }
 0x317   :  { %v895_v47 = vadd.f32 %v894_v44, %v2341_v11  ;;  %v1023_v55 = vunpack.c.l.b16 %v991_v50 }
 0x319   :  { %v944_v49 = vadd.f32 %v943_v0, %v895_v47  ;;  %v961_v32 = vpop.f32.mrf.mxu1 }
 0x31b   :  { %v976_v52 = vmax.f32 %v944_v49, 0.0 }
 0x31d   :  { %v992_v53 = vpack.c.bf16 %v976_v52, %v976_v52 }
 0x31e   :  { %v897_v54 = vpop.f32.mrf.mxu0 }
 0x31f   :  { %v1024_v56 = vunpack.c.l.b16 %v992_v53  ;;  %v898_v45 = vadd.f32 %v897_v54, %v2341_v11 }
 0x321   :  { %v2356_v51 = vpack.c.b16 %v1024_v56, %v1023_v55  ;;  %v947_v1 = vadd.f32 %v946_v37, %v898_v45  ;;  %v963_v44 = vpop.f32.mrf.mxu1 }
 0x323   :  { %1362 = vmatmul.bf16.gmra.mxu0 %v2356_v51  ;;  %v977_v9 = vmax.f32 %v947_v1, 0.0 }
 0x325   :  { %v993_v10 = vpack.c.bf16 %v977_v9, %v977_v9 }
 0x326   :  { %v899_v8 = vpop.f32.mrf.mxu0 }
 0x327   :  { %v900_v62 = vadd.f32 %v899_v8, %v2341_v11  ;;  %v1025_v63 = vunpack.c.l.b16 %v993_v10 }
 0x329   :  { %v949_v57 = vadd.f32 %v948_v48, %v900_v62  ;;  %v966_v54 = vpop.f32.mrf.mxu1 }
 0x32b   :  { %v978_v58 = vmax.f32 %v949_v57, 0.0 }
 0x32d   :  { %v994_v60 = vpack.c.bf16 %v978_v58, %v978_v58 }
 0x32e   :  { %v902_v61 = vpop.f32.mrf.mxu0 }
 0x32f   :  { %v1026_v3 = vunpack.c.l.b16 %v994_v60  ;;  %v903_v4 = vadd.f32 %v902_v61, %v2341_v11 }
 0x331   :  { %v2361_v5 = vpack.c.b16 %v1026_v3, %v1025_v63  ;;  %v952_v6 = vadd.f32 %v951_v35, %v903_v4  ;;  %v968_v10 = vpop.f32.mrf.mxu1 }
 0x333   :  { %1367 = vmatmul.bf16.gmra.mxu0 %v2361_v5  ;;  %v979_v12 = vmax.f32 %v952_v6, 0.0  ;;  %v2089_v6 = vld [vmem:[#allocation4 + $0x8] sm:$0xff] }
 0x335   :  { %v995_v15 = vpack.c.bf16 %v979_v12, %v979_v12  ;;  %v2026_v12 = vld [vmem:[#allocation7 + $0x128] sm:$0xff] }
 0x336   :  { %v904_v2 = vpop.f32.mrf.mxu0 }
 0x337   :  { %v905_v13 = vadd.f32 %v904_v2, %v2341_v11  ;;  %v1027_v18 = vunpack.c.l.b16 %v995_v15  ;;  %v2030_v2 = vld [vmem:[#allocation7 + $0x148] sm:$0xff] }
 0x338   :  { %1295 = vmatpush.bf16.msra.mxu3 %v2030_v2 }
 0x339   :  { %v954_v14 = vadd.f32 %v953_v59, %v905_v13  ;;  %v2025_v13 = vld [vmem:[#allocation7 + $0x120] sm:$0xff] }
 0x33b   :  { %v980_v22 = vmax.f32 %v954_v14, 0.0  ;;  %v2092_v14 = vld [vmem:[#allocation4 + $0x38] sm:$0xff] }
 0x33d   :  { %v996_v16 = vpack.c.bf16 %v980_v22, %v980_v22 }
 0x33e   :  { %v907_v17 = vpop.f32.mrf.mxu0 }
 0x33f   :  { %v1028_v20 = vunpack.c.l.b16 %v996_v16  ;;  %v908_v23 = vadd.f32 %v907_v17, %v2341_v11 }
 0x341   :  { %v1039_v25 = vpack.c.b16 %v1028_v20, %v1027_v18  ;;  %v957_v28 = vadd.f32 %v956_v7, %v908_v23  ;;  %v2090_v7 = vld [vmem:[#allocation4 + $0x20] sm:$0xff] }
 0x343   :  { %1372 = vmatmul.bf16.gmra.mxu0 %v1039_v25  ;;  %v981_v29 = vmax.f32 %v957_v28, 0.0 }
 0x345   :  { %v997_v33 = vpack.c.bf16 %v981_v29, %v981_v29 }
 0x346   :  { %v909_v0 = vpop.f32.mrf.mxu0 }
 0x347   :  { %v910_v30 = vadd.f32 %v909_v0, %v2341_v11  ;;  %v1029_v38 = vunpack.c.l.b16 %v997_v33 }
 0x349   :  { %v959_v31 = vadd.f32 %v958_v24, %v910_v30 }
 0x34b   :  { %v982_v34 = vmax.f32 %v959_v31, 0.0 }
 0x34d   :  { %v998_v36 = vpack.c.bf16 %v982_v34, %v982_v34 }
 0x34e   :  { %v912_v37 = vpop.f32.mrf.mxu0 }
 0x34f   :  { %v1030_v39 = vunpack.c.l.b16 %v998_v36  ;;  %v913_v40 = vadd.f32 %v912_v37, %v2341_v11 }
 0x351   :  { %v1040_v41 = vpack.c.b16 %v1030_v39, %v1029_v38  ;;  %v962_v43 = vadd.f32 %v961_v32, %v913_v40 }
 0x353   :  { %1377 = vmatmul.bf16.gmra.mxu0 %v1040_v41  ;;  %v983_v47 = vmax.f32 %v962_v43, 0.0 }
 0x355   :  { %v999_v50 = vpack.c.bf16 %v983_v47, %v983_v47 }
 0x356   :  { %v914_v46 = vpop.f32.mrf.mxu0 }
 0x357   :  { %v915_v48 = vadd.f32 %v914_v46, %v2341_v11  ;;  %v1031_v56 = vunpack.c.l.b16 %v999_v50 }
 0x359   :  { %v964_v49 = vadd.f32 %v963_v44, %v915_v48 }
 0x35b   :  { %v984_v52 = vmax.f32 %v964_v49, 0.0 }
 0x35d   :  { %v1000_v53 = vpack.c.bf16 %v984_v52, %v984_v52 }
 0x35e   :  { %v917_v55 = vpop.f32.mrf.mxu0 }
 0x35f   :  { %v1032_v45 = vunpack.c.l.b16 %v1000_v53  ;;  %v918_v35 = vadd.f32 %v917_v55, %v2341_v11 }
 0x361   :  { %v1041_v1 = vpack.c.b16 %v1032_v45, %v1031_v56  ;;  %v967_v8 = vadd.f32 %v966_v54, %v918_v35 }
 0x363   :  { %1382 = vmatmul.bf16.gmra.mxu0 %v1041_v1  ;;  %v985_v62 = vmax.f32 %v967_v8, 0.0 }
 0x365   :  { %v1001_v59 = vpack.c.bf16 %v985_v62, %v985_v62 }
 0x366   :  { %v919_v9 = vpop.f32.mrf.mxu0 }
 0x367   :  { %v920_v57 = vadd.f32 %v919_v9, %v2341_v11  ;;  %v1033_v63 = vunpack.c.l.b16 %v1001_v59  ;;  %v2088_v11 = vld [vmem:[#allocation4] sm:$0xff] }
 0x369   :  { %v969_v58 = vadd.f32 %v968_v10, %v920_v57 }
 0x36b   :  { %v986_v60 = vmax.f32 %v969_v58, 0.0 }
 0x36d   :  { %v1002_v61 = vpack.c.bf16 %v986_v60, %v986_v60 }
 0x36f   :  { %v1034_v3 = vunpack.c.l.b16 %v1002_v61 }
 0x371   :  { %v1042_v4 = vpack.c.b16 %v1034_v3, %v1033_v63 }
 0x373   :  { %1051 = vmatpush.bf16.msra.mxu2 %v1042_v4  ;;  %1387 = vmatmul.bf16.gmra.mxu0 %v1042_v4 }
 0x377   :  { %1052 = vmatpush.bf16.msra.mxu2 %v1041_v1 }
 0x37b   :  { %1053 = vmatpush.bf16.msra.mxu2 %v1040_v41 }
 0x37f   :  { %1054 = vmatpush.bf16.msra.mxu2 %v1039_v25 }
 0x380   :  { %v1353_v4 = vpop.f32.mrf.mxu0 }
 0x383   :  { %1055 = vmatpush.bf16.msra.mxu2 %v2361_v5  ;;  %v2029_v5 = vld [vmem:[#allocation7 + $0x140] sm:$0xff] }
 0x384   :  { %1296 = vmatpush.bf16.msra.mxu3 %v2029_v5 }
 0x387   :  { %1056 = vmatpush.bf16.msra.mxu2 %v2356_v51  ;;  %v2028_v51 = vld [vmem:[#allocation7 + $0x138] sm:$0xff] }
 0x388   :  { %1297 = vmatpush.bf16.msra.mxu3 %v2028_v51 }
 0x38b   :  { %1057 = vmatpush.bf16.msra.mxu2 %v2351_v42  ;;  %v2027_v42 = vld [vmem:[#allocation7 + $0x130] sm:$0xff] }
 0x38c   :  { %1298 = vmatpush.bf16.msra.mxu3 %v2027_v42  ;;  %v1355_v42 = vpop.f32.mrf.mxu0 }
 0x38f   :  { %1058 = vmatpush.bf16.msra.mxu2 %v2346_v27  ;;  %v2091_v27 = vld [vmem:[#allocation4 + $0x30] sm:$0xff] }
 0x390   :  { %1299 = vmatpush.bf16.msra.mxu3 %v2026_v12  ;;  %v1196_v12 = vld [vmem:[#allocation7 + $0x190] sm:$0x1] }
 0x392   :  { %1059 = vmatmul.bf16.vlgmr.msra.gmra.mxu2 %v2088_v11 }
 0x394   :  { %1300 = vmatpush.bf16.msra.mxu3 %v2025_v13  ;;  %v1197_v13 = vunpack.c.l.bf16 %v1196_v12 }
 0x3a2   :  { %1064 = vmatmul.bf16.gmra.mxu2 %v2089_v6 }
 0x3b2   :  { %1069 = vmatmul.bf16.gmra.mxu2 %v2281_v19  ;;  %v2024_v19 = vld [vmem:[#allocation7 + $0x118] sm:$0xff] }
 0x3b3   :  { %1301 = vmatpush.bf16.msra.mxu3 %v2024_v19 }
 0x3c2   :  { %1074 = vmatmul.bf16.gmra.mxu2 %v2290_v26  ;;  %v2023_v26 = vld [vmem:[#allocation7 + $0x110] sm:$0xff] }
 0x3c3   :  { %1302 = vmatpush.bf16.msra.mxu3 %v2023_v26  ;;  %v2378_v26 = vperm.slane %v1197_v13, 0 }
 0x3d2   :  { %1079 = vmatmul.bf16.gmra.mxu2 %v2090_v7 }
 0x3e2   :  { %1084 = vmatmul.bf16.gmra.mxu2 %v2283_v21 }
 0x3f2   :  { %1089 = vmatmul.bf16.gmra.mxu2 %v2091_v27  ;;  %v1358_v27 = vpop.f32.mrf.mxu0 }
 0x402   :  { %1094 = vmatmul.bf16.gmra.mxu2 %v2092_v14  ;;  %v1360_v14 = vpop.f32.mrf.mxu0 }
 0x415   :  { %v1060_v21 = vpop.f32.mrf.mxu2 }
 0x416   :  { %v1100_v15 = vpack.c.bf16 %v1060_v21, %v1060_v21 }
 0x418   :  { %v1132_v17 = vunpack.c.l.b16 %v1100_v15 }
 0x41d   :  { %v1062_v22 = vpop.f32.mrf.mxu2 }
 0x41e   :  { %v1101_v16 = vpack.c.bf16 %v1062_v22, %v1062_v22 }
 0x420   :  { %v1133_v18 = vunpack.c.l.b16 %v1101_v16 }
 0x422   :  { %v1148_v20 = vpack.c.b16 %v1133_v18, %v1132_v17  ;;  %v1363_v18 = vpop.f32.mrf.mxu0 }
 0x424   :  { %1303 = vmatmul.bf16.vlgmr.msra.gmra.mxu3 %v1148_v20 }
 0x425   :  { %v1065_v23 = vpop.f32.mrf.mxu2 }
 0x426   :  { %v1102_v24 = vpack.c.bf16 %v1065_v23, %v1065_v23 }
 0x428   :  { %v1134_v0 = vunpack.c.l.b16 %v1102_v24 }
 0x42d   :  { %v1067_v25 = vpop.f32.mrf.mxu2 }
 0x42e   :  { %v1103_v28 = vpack.c.bf16 %v1067_v25, %v1067_v25 }
 0x430   :  { %v1135_v29 = vunpack.c.l.b16 %v1103_v28 }
 0x432   :  { %v1149_v30 = vpack.c.b16 %v1135_v29, %v1134_v0  ;;  %v1365_v0 = vpop.f32.mrf.mxu0 }
 0x434   :  { %1308 = vmatmul.bf16.gmra.mxu3 %v1149_v30 }
 0x435   :  { %v1070_v31 = vpop.f32.mrf.mxu2 }
 0x436   :  { %v1104_v32 = vpack.c.bf16 %v1070_v31, %v1070_v31 }
 0x438   :  { %v1136_v36 = vunpack.c.l.b16 %v1104_v32 }
 0x43d   :  { %v1072_v33 = vpop.f32.mrf.mxu2 }
 0x43e   :  { %v1105_v34 = vpack.c.bf16 %v1072_v33, %v1072_v33 }
 0x440   :  { %v1137_v37 = vunpack.c.l.b16 %v1105_v34 }
 0x442   :  { %v1150_v38 = vpack.c.b16 %v1137_v37, %v1136_v36  ;;  %v1368_v37 = vpop.f32.mrf.mxu0 }
 0x444   :  { %1313 = vmatmul.bf16.gmra.mxu3 %v1150_v38 }
 0x445   :  { %v1075_v39 = vpop.f32.mrf.mxu2 }
 0x446   :  { %v1106_v40 = vpack.c.bf16 %v1075_v39, %v1075_v39 }
 0x448   :  { %v1138_v44 = vunpack.c.l.b16 %v1106_v40 }
 0x44d   :  { %v1077_v41 = vpop.f32.mrf.mxu2 }
 0x44e   :  { %v1107_v43 = vpack.c.bf16 %v1077_v41, %v1077_v41 }
 0x450   :  { %v1139_v46 = vunpack.c.l.b16 %v1107_v43 }
 0x452   :  { %v1151_v47 = vpack.c.b16 %v1139_v46, %v1138_v44  ;;  %v1370_v44 = vpop.f32.mrf.mxu0 }
 0x454   :  { %1318 = vmatmul.bf16.gmra.mxu3 %v1151_v47 }
 0x455   :  { %v1080_v48 = vpop.f32.mrf.mxu2 }
 0x456   :  { %v1108_v49 = vpack.c.bf16 %v1080_v48, %v1080_v48 }
 0x458   :  { %v1140_v53 = vunpack.c.l.b16 %v1108_v49 }
 0x45d   :  { %v1082_v50 = vpop.f32.mrf.mxu2 }
 0x45e   :  { %v1109_v52 = vpack.c.bf16 %v1082_v50, %v1082_v50 }
 0x460   :  { %v1141_v54 = vunpack.c.l.b16 %v1109_v52  ;;  %v1373_v52 = vpop.f32.mrf.mxu0 }
 0x462   :  { %v1152_v55 = vpack.c.b16 %v1141_v54, %v1140_v53 }
 0x464   :  { %1323 = vmatmul.bf16.gmra.mxu3 %v1152_v55 }
 0x465   :  { %v1085_v56 = vpop.f32.mrf.mxu2 }
 0x466   :  { %v1110_v45 = vpack.c.bf16 %v1085_v56, %v1085_v56 }
 0x468   :  { %v1142_v8 = vunpack.c.l.b16 %v1110_v45 }
 0x46d   :  { %v1087_v35 = vpop.f32.mrf.mxu2 }
 0x46e   :  { %v1111_v1 = vpack.c.bf16 %v1087_v35, %v1087_v35 }
 0x470   :  { %v1143_v9 = vunpack.c.l.b16 %v1111_v1 }
 0x472   :  { %v1153_v62 = vpack.c.b16 %v1143_v9, %v1142_v8  ;;  %v1375_v8 = vpop.f32.mrf.mxu0 }
 0x474   :  { %1328 = vmatmul.bf16.gmra.mxu3 %v1153_v62 }
 0x475   :  { %v1090_v57 = vpop.f32.mrf.mxu2 }
 0x476   :  { %v1112_v10 = vpack.c.bf16 %v1090_v57, %v1090_v57 }
 0x478   :  { %v1144_v60 = vunpack.c.l.b16 %v1112_v10 }
 0x47d   :  { %v1092_v58 = vpop.f32.mrf.mxu2 }
 0x47e   :  { %v1113_v59 = vpack.c.bf16 %v1092_v58, %v1092_v58  ;;  %v1378_v58 = vpop.f32.mrf.mxu0 }
 0x480   :  { %v1145_v61 = vunpack.c.l.b16 %v1113_v59 }
 0x482   :  { %v1154_v63 = vpack.c.b16 %v1145_v61, %v1144_v60 }
 0x484   :  { %1333 = vmatmul.bf16.gmra.mxu3 %v1154_v63 }
 0x485   :  { %v1095_v3 = vpop.f32.mrf.mxu2 }
 0x486   :  { %v1114_v11 = vpack.c.bf16 %v1095_v3, %v1095_v3  ;;  %v1380_v61 = vpop.f32.mrf.mxu0 }
 0x488   :  { %v1146_v2 = vunpack.c.l.b16 %v1114_v11 }
 0x48d   :  { %v1097_v6 = vpop.f32.mrf.mxu2 }
 0x48e   :  { %v1115_v7 = vpack.c.bf16 %v1097_v6, %v1097_v6  ;;  %v1383_v3 = vpop.f32.mrf.mxu0 }
 0x490   :  { %v1147_v5 = vunpack.c.l.b16 %v1115_v7 }
 0x492   :  { %v1155_v51 = vpack.c.b16 %v1147_v5, %v1146_v2 }
 0x494   :  { %1338 = vmatmul.bf16.gmra.mxu3 %v1155_v51 }
 0x496   :  { %v1385_v11 = vpop.f32.mrf.mxu0 }
 0x49e   :  { %v1388_v7 = vpop.f32.mrf.mxu0 }
 0x4a7   :  { %v1304_v19 = vpop.f32.mrf.mxu3 }
 0x4a8   :  { %v1305_v21 = vadd.f32 %v1304_v19, %v2378_v26  ;;  %v1390_v19 = vpop.f32.mrf.mxu0 }
 0x4aa   :  { %v1354_v22 = vadd.f32 %v1353_v4, %v1305_v21 }
 0x4ac   :  { %v1393_v20 = vmax.f32 %v1354_v22, 0.0 }
 0x4af   :  { %v1306_v15 = vpop.f32.mrf.mxu3 }
 0x4b0   :  { %v1307_v16 = vadd.f32 %v1306_v15, %v2378_v26 }
 0x4b2   :  { %v1356_v17 = vadd.f32 %v1355_v42, %v1307_v16 }
 0x4b4   :  { %v1394_v23 = vmax.f32 %v1356_v17, 0.0 }
 0x4b6   :  { %v2382_v24 = vpack.c.bf16 %v1394_v23, %v1393_v20 }
 0x4b7   :  { %v1309_v25 = vpop.f32.mrf.mxu3 }
 0x4b8   :  { %v1310_v28 = vadd.f32 %v1309_v25, %v2378_v26 }
 0x4ba   :  { %v1359_v30 = vadd.f32 %v1358_v27, %v1310_v28 }
 0x4bc   :  { %v1395_v33 = vmax.f32 %v1359_v30, 0.0 }
 0x4bf   :  { %v1311_v29 = vpop.f32.mrf.mxu3 }
 0x4c0   :  { %v1312_v31 = vadd.f32 %v1311_v29, %v2378_v26 }
 0x4c2   :  { %v1361_v32 = vadd.f32 %v1360_v14, %v1312_v31 }
 0x4c4   :  { %v1396_v34 = vmax.f32 %v1361_v32, 0.0 }
 0x4c6   :  { %v2386_v36 = vpack.c.bf16 %v1396_v34, %v1395_v33 }
 0x4c7   :  { %v1314_v38 = vpop.f32.mrf.mxu3 }
 0x4c8   :  { %v1315_v39 = vadd.f32 %v1314_v38, %v2378_v26 }
 0x4ca   :  { %v1364_v41 = vadd.f32 %v1363_v18, %v1315_v39 }
 0x4cc   :  { %v1397_v47 = vmax.f32 %v1364_v41, 0.0 }
 0x4cf   :  { %v1316_v40 = vpop.f32.mrf.mxu3 }
 0x4d0   :  { %v1317_v43 = vadd.f32 %v1316_v40, %v2378_v26  ;;  %v2201_v40 = vmov 0  }
 0x4d1   :  { %2078 = vset.pattern.permute.xlu0 %v2201_v40 }
 0x4d2   :  { %v1366_v46 = vadd.f32 %v1365_v0, %v1317_v43  ;;  %v1417_v43 = vld [vmem:[#allocation7 + $0x198] sm:$0xf] }
 0x4d4   :  { %v1398_v48 = vmax.f32 %v1366_v46, 0.0 }
 0x4d6   :  { %v2390_v49 = vpack.c.bf16 %v1398_v48, %v1397_v47  ;;  %v2079_v48 = vld [vmem:[#allocation6] ss:$0 sm:$0xff] }
 0x4d7   :  { %v1319_v50 = vpop.f32.mrf.mxu3 }
 0x4d8   :  { %v1320_v53 = vadd.f32 %v1319_v50, %v2378_v26 }
 0x4da   :  { %v1369_v55 = vadd.f32 %v1368_v37, %v1320_v53 }
 0x4dc   :  { %v1399_v35 = vmax.f32 %v1369_v55, 0.0 }
 0x4df   :  { %v1321_v54 = vpop.f32.mrf.mxu3 }
 0x4e0   :  { %v1322_v56 = vadd.f32 %v1321_v54, %v2378_v26 }
 0x4e2   :  { %v1371_v45 = vadd.f32 %v1370_v44, %v1322_v56  ;;  %v1439_v44 = vlaneseq }
 0x4e4   :  { %v1400_v1 = vmax.f32 %v1371_v45, 0.0  ;;  %v1440_v47 = vshrl.u32 %v1439_v44, 7 }
 0x4e6   :  { %v1412_v9 = vpack.c.bf16 %v1400_v1, %v1399_v35  ;;  %vm1442_vm0 = vcmp.eq.s32.totalorder %v1440_v47, %v2079_v48  ;;  %v2046_v35 = vld [vmem:[#allocation7 + $0x1d8] sm:$0xff]  ;;  %v2045_v1 = vld [vmem:[#allocation7 + $0x1d0] sm:$0xff] }
 0x4e7   :  { %v1324_v62 = vpop.f32.mrf.mxu3  ;;  %1538 = vmatpush.bf16.msrb.mxu3 %v2046_v35 }
 0x4e8   :  { %v1325_v57 = vadd.f32 %v1324_v62, %v2378_v26  ;;  %v2042_v62 = vld [vmem:[#allocation7 + $0x1b8] sm:$0xff] }
 0x4ea   :  { %v1374_v10 = vadd.f32 %v1373_v52, %v1325_v57 }
 0x4eb   :  { %1539 = vmatpush.bf16.msrb.mxu3 %v2045_v1 }
 0x4ec   :  { %v1401_v38 = vmax.f32 %v1374_v10, 0.0  ;;  %v2041_v10 = vld [vmem:[#allocation7 + $0x1b0] sm:$0xff] }
 0x4ef   :  { %v1326_v59 = vpop.f32.mrf.mxu3 }
 0x4f0   :  { %v1327_v20 = vadd.f32 %v1326_v59, %v2378_v26  ;;  %v2040_v59 = vld [vmem:[#allocation7 + $0x1a8] sm:$0xff] }
 0x4f2   :  { %v1376_v30 = vadd.f32 %v1375_v8, %v1327_v20  ;;  %v2044_v8 = vld [vmem:[#allocation7 + $0x1c8] sm:$0xff] }
 0x4f3   :  { %1540 = vmatpush.bf16.msrb.mxu3 %v2044_v8  ;;  %v1569_v20 = vld [vmem:[#allocation7 + $0x228] sm:$0x1] }
 0x4f4   :  { %v1402_v34 = vmax.f32 %v1376_v30, 0.0 }
 0x4f6   :  { %v1413_v39 = vpack.c.bf16 %v1402_v34, %v1401_v38 }
 0x4f7   :  { %v1329_v60 = vpop.f32.mrf.mxu3 }
 0x4f8   :  { %v1330_v22 = vadd.f32 %v1329_v60, %v2378_v26 }
 0x4fa   :  { %v1379_v0 = vadd.f32 %v1378_v58, %v1330_v22 }
 0x4fc   :  { %v1403_v33 = vmax.f32 %v1379_v0, 0.0 }
 0x4ff   :  { %v1331_v63 = vpop.f32.mrf.mxu3 }
 0x500   :  { %v1332_v14 = vadd.f32 %v1331_v63, %v2378_v26 }
 0x502   :  { %v1381_v23 = vadd.f32 %v1380_v61, %v1332_v14 }
 0x504   :  { %v1404_v31 = vmax.f32 %v1381_v23, 0.0  ;;  %v1570_v23 = vunpack.c.l.bf16 %v1569_v20 }
 0x506   :  { %v1414_v37 = vpack.c.bf16 %v1404_v31, %v1403_v33 }
 0x507   :  { %v1334_v4 = vpop.f32.mrf.mxu3 }
 0x508   :  { %v1335_v27 = vadd.f32 %v1334_v4, %v2378_v26  ;;  %v2054_v4 = vld [vmem:[#allocation7 + $0x220] sm:$0xff] }
 0x50a   :  { %v1384_v16 = vadd.f32 %v1383_v3, %v1335_v27  ;;  %v2039_v3 = vld [vmem:[#allocation7 + $0x1a0] sm:$0xff] }
 0x50c   :  { %v1405_v29 = vmax.f32 %v1384_v16, 0.0 }
 0x50f   :  { %v1336_v6 = vpop.f32.mrf.mxu3 }
 0x510   :  { %v1337_v51 = vadd.f32 %v1336_v6, %v2378_v26  ;;  %v2052_v6 = vld [vmem:[#allocation7 + $0x210] sm:$0xff] }
 0x512   :  { %v1386_v21 = vadd.f32 %v1385_v11, %v1337_v51  ;;  %v2053_v11 = vld [vmem:[#allocation7 + $0x218] sm:$0xff] }
 0x514   :  { %v1406_v25 = vmax.f32 %v1386_v21, 0.0 }
 0x516   :  { %v1415_v32 = vpack.c.bf16 %v1406_v25, %v1405_v29  ;;  %v1634_v25 = vand.u32 127, %v1439_v44 }
 0x517   :  { %v1339_v2 = vpop.f32.mrf.mxu3 }
 0x518   :  { %v1340_v5 = vadd.f32 %v1339_v2, %v2378_v26  ;;  %v2050_v2 = vld [vmem:[#allocation7 + $0x200] sm:$0xff]  ;;  %vm1635_vm1 = vcmp.lt.s32.totalorder %v1634_v25, 4 }
 0x51a   :  { %v1389_v12 = vadd.f32 %v1388_v7, %v1340_v5  ;;  %v2051_v7 = vld [vmem:[#allocation7 + $0x208] sm:$0xff]  ;;  %v2049_v5 = vld [vmem:[#allocation7 + $0x1f8] sm:$0xff] }
 0x51c   :  { %v1407_v17 = vmax.f32 %v1389_v12, 0.0  ;;  %v2048_v12 = vld [vmem:[#allocation7 + $0x1f0] sm:$0xff] }
 0x51f   :  { %v1341_v42 = vpop.f32.mrf.mxu3 }
 0x520   :  { %v1342_v13 = vadd.f32 %v1341_v42, %v2378_v26  ;;  %v1431_v26 = vld [vmem:[#allocation7 + $0x19c] sm:$0x1] }
 0x521   :  { %v1432_v41 = vunpack.c.l.bf16 %v1431_v26 }
 0x522   :  { %v1391_v15 = vadd.f32 %v1390_v19, %v1342_v13  ;;  %v2047_v13 = vld [vmem:[#allocation7 + $0x1e8] sm:$0xff]  ;;  %v1487_v19 = vld [vmem:[#allocation7 + $0x1e0] sm:$0x1] }
 0x523   :  { %1435 = vperm.xlu0 %2078, %v1432_v41   ;;  %v1488_v14 = vunpack.c.l.bf16 %v1487_v19 }
 0x524   :  { %v1408_v18 = vmax.f32 %v1391_v15, 0.0 }
 0x525   :  { %v1489_v21 = vperm.slane %v1488_v14, 0 }
 0x526   :  { %v1416_v28 = vpack.c.bf16 %v1408_v18, %v1407_v17 }
 0x528   :  { %1418 = vmatpush.bf16.xpose.msra.mxu1 %v1416_v28  ;;  %1457 = vmatpush.bf16.msrb.mxu2 %v1416_v28  ;;  %v1571_v28 = vperm.slane %v1570_v23, 0 }
 0x52c   :  { %1458 = vmatpush.bf16.msrb.mxu2 %v1415_v32 }
 0x530   :  { %1419 = vmatpush.bf16.xpose.msra.mxu1 %v1415_v32  ;;  %1459 = vmatpush.bf16.msrb.mxu2 %v1414_v37 }
 0x534   :  { %1460 = vmatpush.bf16.msrb.mxu2 %v1413_v39 }
 0x538   :  { %1420 = vmatpush.bf16.xpose.msra.mxu1 %v1414_v37  ;;  %1461 = vmatpush.bf16.msrb.mxu2 %v1412_v9 }
 0x53c   :  { %1462 = vmatpush.bf16.msrb.mxu2 %v2390_v49 }
 0x540   :  { %1421 = vmatpush.bf16.xpose.msra.mxu1 %v1413_v39  ;;  %1463 = vmatpush.bf16.msrb.mxu2 %v2386_v36 }
 0x544   :  { %1464 = vmatpush.bf16.msrb.mxu2 %v2382_v24 }
 0x548   :  { %1422 = vmatpush.bf16.xpose.msra.mxu1 %v1412_v9  ;;  %v2043_v9 = vld [vmem:[#allocation7 + $0x1c0] sm:$0xff] }
 0x549   :  { %1541 = vmatpush.bf16.msrb.mxu3 %v2043_v9 }
 0x54d   :  { %1542 = vmatpush.bf16.msrb.mxu3 %v2042_v62 }
 0x550   :  { %1423 = vmatpush.bf16.xpose.msra.mxu1 %v2390_v49 }
 0x551   :  { %1543 = vmatpush.bf16.msrb.mxu3 %v2041_v10 }
 0x555   :  { %1544 = vmatpush.bf16.msrb.mxu3 %v2040_v59 }
 0x558   :  { %1424 = vmatpush.bf16.xpose.msra.mxu1 %v2386_v36 }
 0x559   :  { %1545 = vmatpush.bf16.msrb.mxu3 %v2039_v3 }
 0x560   :  { %1425 = vmatpush.bf16.xpose.msra.mxu1 %v2382_v24 }
 0x567   :  { %1426 = vmatmul.bf16.vlgmr.msra.gmra.mxu1 %v1417_v43 }
 0x568   :  { %1620 = vmatpush.bf16.msrb.mxu1 %v2054_v4 }
 0x56c   :  { %1621 = vmatpush.bf16.msrb.mxu1 %v2053_v11 }
 0x570   :  { %1622 = vmatpush.bf16.msrb.mxu1 %v2052_v6 }
 0x574   :  { %1623 = vmatpush.bf16.msrb.mxu1 %v2051_v7 }
 0x578   :  { %1624 = vmatpush.bf16.msrb.mxu1 %v2050_v2 }
 0x57c   :  { %1625 = vmatpush.bf16.msrb.mxu1 %v2049_v5 }
 0x580   :  { %1626 = vmatpush.bf16.msrb.mxu1 %v2048_v12 }
 0x584   :  { %1627 = vmatpush.bf16.msrb.mxu1 %v2047_v13 }
 0x595   :  { %v1436_v46 = vpop.permute.xlu0 %1435 }
 0x5e4   :  { %v1427_v50 = vpop.f32.mrf.mxu1 }
 0x5e5   :  { %v1438_v52 = vadd.f32 %v1436_v46, %v1427_v50 }
 0x5e7   :  { %v1443_v53 = vperm.slane %v1438_v52, 0 }
 0x5e9   :  { %v1444_v54 = vsel %vm1442_vm0, %v1443_v53, -1e+30 }
 0x5ea   :  { %1445 = vmax.xlane.f32.xlu0 %v1444_v54 }
 0x5ec   :  { %v1429_v55 = vpop.f32.mrf.mxu1 }
 0x65d   :  { %v1446_v56 = vpop.xlane.xlu0 %1445 }
 0x65e   :  { %v1447_v49 = vsub.f32 %v1444_v54, %v1446_v56 }
 0x660   :  { %v1448_v45 = vmul.f32 1.442695, %v1447_v49 }
 0x662   :  { %2080 = vpow2.f32 %v1448_v45 }
 0x668   :  { %v2081_v36 = vpop.eup %2080 }
 0x669   :  { %v1450_v24 = vsel %vm1442_vm0, %v2081_v36, 0.0 }
 0x66a   :  { %1451 = vadd.xlane.f32.xlu1 %v1450_v24 }
 0x6dd   :  { %v1452_v57 = vpop.xlane.xlu1 %1451 }
 0x6de   :  { %v1453_v58 = vmax.f32 %v1452_v57, 1e-30 }
 0x6e0   :  { %2082 = vrcp.f32 %v1453_v58 }
 0x6e6   :  { %v2083_v60 = vpop.eup %2082 }
 0x6e7   :  { %v1455_v61 = vmul.f32 %v2083_v60, %v1450_v24 }
 0x6e9   :  { %v1456_v63 = vpack.c.bf16 %v1455_v61, %v1455_v61 }
 0x6eb   :  { %1465 = vmatmul.bf16.vlgmr.msrb.gmra.mxu2 %v1456_v63 }
 0x76e   :  { %v1466_v51 = vpop.f32.mrf.mxu2 }
 0x76f   :  { %v1486_v42 = vpack.c.bf16 %v1466_v51, %v1466_v51 }
 0x771   :  { %1546 = vmatmul.bf16.vlgmr.msrb.gmra.mxu3 %v1486_v42 }
 0x776   :  { %v1468_v27 = vpop.f32.mrf.mxu2 }
 0x7f4   :  { %v1547_v15 = vpop.f32.mrf.mxu3 }
 0x7f5   :  { %v1548_v22 = vadd.f32 %v1547_v15, %v1489_v21 }
 0x7f7   :  { %v1551_v16 = vmax.f32 %v1548_v22, 0.0 }
 0x7f9   :  { %v1568_v17 = vpack.c.bf16 %v1551_v16, %v1551_v16 }
 0x7fb   :  { %1628 = vmatmul.bf16.vlgmr.msrb.gmra.mxu1 %v1568_v17 }
 0x7fc   :  { %v1549_v18 = vpop.f32.mrf.mxu3 }
 0x878   :  { %v1629_v0 = vpop.f32.mrf.mxu1 }
 0x879   :  { %v1630_v29 = vadd.f32 %v1629_v0, %v1571_v28 }
 0x87b   :  { %v1636_v30 = vsel %vm1635_vm1, %v1630_v29, -1e+30 }
 0x87c   :  { %1637 = vmax.xlane.f32.xlu1 %v1636_v30 }
 0x880   :  { %v1631_v31 = vpop.f32.mrf.mxu1 }
 0x8ef   :  { %v1638_v32 = vpop.xlane.xlu1 %1637 }
 0x8f0   :  { %v1639_v33 = vsub.f32 %v1636_v30, %v1638_v32 }
 0x8f2   :  { %v1640_v34 = vmul.f32 1.442695, %v1639_v33 }
 0x8f4   :  { %2084 = vpow2.f32 %v1640_v34 }
 0x8fa   :  { %v2085_v37 = vpop.eup %2084 }
 0x8fb   :  { %1642 = vadd.xlane.f32.xlu2 %v2085_v37 }
 0x96e   :  { %v1643_v38 = vpop.xlane.xlu2 %1642 }
 0x96f   :  { %2086 = vlog2.f32 %v1643_v38 }
 0x975   :  { %v2087_v39 = vpop.eup %2086 }
 0x976   :  { %v1645_v26 = vmul.f32 0.6931472, %v2087_v39 }
 0x978   :  { %v1646_v40 = vsub.f32 %v1639_v33, %v1645_v26 }
 0x97a   :  { %1647 = vst [vmem:[%s2417_s4] sm:$0xff] %v1646_v40 }
 0x97b   :  { %1652 = vsyncpa [#allocation3], 1 }
 0x97c   :  { %1653 = vsyncpa [#allocation5], 1 }
 0x97d   :  { %1654 = vsyncpa [#allocation8], 1 }

</bundles_post_ra>
